<compile_context>
chip_gen: v7x
topology: tpu7x:2x2x1
jax: 0.10.0
libtpu: 0.0.40
codegen_flags: <defaults>
</compile_context>

<pallas_src>
import math
from functools import partial

import jax
import jax.numpy as jnp
from jax import lax
from jax.experimental import pallas as pl
from jax.experimental.pallas import tpu as pltpu


def _silu(v):
    return v * jax.nn.sigmoid(v)


def _softplus(v):
    # Numerically stable softplus using only exp/log (EUP-friendly).
    return jnp.maximum(v, 0.0) + jnp.log(1.0 + jnp.exp(-jnp.abs(v)))


def _mamba_chunk_kernel(
    x_ref,                           # (T, D)   input chunk (processing order)
    win_x_ref, win_z_ref,            # (D, ED)  tied in_proj halves (bf16)
    wout_ref,                        # (ED, D)  tied out_proj (bf16)
    conv_w_ref, conv_b_ref,          # (K, ED), (1, ED)    per-direction, f32
    wx_dt_ref, wx_bct_ref,           # (ED, R), (2N, ED)   per-direction, bf16
    w_dt_ref, b_dt_ref,              # (R, ED) bf16, (1, ED) f32
    a_neg_ref, d_skip_ref,           # (N, ED), (1, ED)    per-direction, f32
    y_ref,                           # (T, D)   output chunk
    xconv_ref,                       # (T+K-1, ED) f32 scratch: conv input + halo
    h_ref,                           # (N, ED)  f32 scratch: SSM state carry
    ys_ref,                          # (T, ED)  f32 scratch: per-chunk readout
):
    f32 = jnp.float32
    bf16 = jnp.bfloat16
    T, _ = x_ref.shape
    ED = win_x_ref.shape[1]
    N = a_neg_ref.shape[0]
    K = conv_w_ref.shape[0]

    c = pl.program_id(2)

    # Reset carried state at the start of each (batch, direction) sequence.
    @pl.when(c == 0)
    def _():
        h_ref[...] = jnp.zeros_like(h_ref)
        xconv_ref[0:K - 1, :] = jnp.zeros((K - 1, ED), f32)

    xb = x_ref[...].astype(bf16)
    xc_raw = jnp.dot(xb, win_x_ref[...], preferred_element_type=f32)   # (T, ED)
    z = jnp.dot(xb, win_z_ref[...], preferred_element_type=f32)        # (T, ED)

    # Causal depthwise conv1d via halo'd sublane shifts (no LxL matmuls).
    xconv_ref[K - 1:K - 1 + T, :] = xc_raw
    acc = xc_raw * conv_w_ref[K - 1:K, :]
    for j in range(1, K):
        acc = acc + (xconv_ref[K - 1 - j:K - 1 - j + T, :]
                     * conv_w_ref[K - 1 - j:K - j, :])
    # Carry the last K-1 conv inputs to the next chunk.
    tail = xconv_ref[T:T + K - 1, :]
    xconv_ref[0:K - 1, :] = tail
    xc = _silu(acc + conv_b_ref[...])                                  # (T, ED)

    # x_proj: dt projection + fused [B | C] projection, produced transposed.
    xcb = xc.astype(bf16)
    dt_in = jnp.dot(xcb, wx_dt_ref[...], preferred_element_type=f32)   # (T, R)
    bcT = lax.dot_general(wx_bct_ref[...], xcb,
                          (((1,), (1,)), ((), ())),
                          preferred_element_type=f32)                  # (2N, T)
    bmT = bcT[0:N, :]                                                  # (N, T)
    cmT = bcT[N:2 * N, :]                                              # (N, T)
    delta = _softplus(
        jnp.dot(dt_in.astype(bf16), w_dt_ref[...], preferred_element_type=f32)
        + b_dt_ref[...])                                               # (T, ED)

    a_neg = a_neg_ref[...]                                             # (N, ED)
    dx = delta * xc                                                    # (T, ED)

    # Selective scan over the (small, static) chunk; h is carried in VMEM
    # scratch across chunks.  All slices are static, live ranges are bounded
    # by the chunk boundary.
    # TODO(synk): tile ED inside this loop for very large d_inner (vreg budget).
    h = h_ref[...]
    for t in range(T):
        da_t = jnp.exp(delta[t:t + 1, :] * a_neg)                      # (N, ED)
        h = da_t * h + dx[t:t + 1, :] * bmT[:, t:t + 1]                # (N, ED)
        ys_ref[t:t + 1, :] = jnp.sum(cmT[:, t:t + 1] * h,
                                     axis=0, keepdims=True)            # (1, ED)
    h_ref[...] = h

    y = ys_ref[...] + xc * d_skip_ref[...]
    y = y * _silu(z)
    y_ref[...] = jnp.dot(y.astype(bf16), wout_ref[...],
                         preferred_element_type=f32).astype(y_ref.dtype)


def _add_ln_kernel(x_ref, yf_ref, yb_ref, g_ref, b_ref, o_ref):
    f32 = jnp.float32
    s = (x_ref[...].astype(f32) + yf_ref[...].astype(f32)
         + yb_ref[...].astype(f32))
    mu = jnp.mean(s, axis=-1, keepdims=True)
    ctr = s - mu
    var = jnp.mean(ctr * ctr, axis=-1, keepdims=True)
    o_ref[...] = (ctr * lax.rsqrt(var + 1e-5) * g_ref[...].astype(f32)
                  + b_ref[...].astype(f32)).astype(o_ref.dtype)


def _pick_seq_chunk(L):
    # Prefer large chunks (>=256 keeps the v6e 256x256 MXU busy); small L just
    # uses the whole sequence.
    for t in (512, 256, 128, 64, 32, 16, 8):
        if L % t == 0:
            return t
    return L


@partial(jax.jit, static_argnames=("seq_chunk",))
def bidir_mamba_block(x, win_x, win_z, wout, conv_w, conv_b,
                      wx_dt, wx_b, wx_c, w_dt, b_dt, a_log, d_skip,
                      ln_g, ln_b, seq_chunk=None):
    f32 = jnp.float32
    bf16 = jnp.bfloat16
    B, L, D = x.shape
    ED = win_x.shape[1]
    N = wx_b.shape[2]
    R = wx_dt.shape[2]
    K = conv_w.shape[1]

    T = seq_chunk if seq_chunk is not None else _pick_seq_chunk(L)
    if L % T != 0 or (T % 8 != 0 and T != L):
        raise ValueError(f"seq chunk {T} must divide L={L} and be 8-aligned")
    nc = L // T

    # Sequence flips in XLA (cheap HBM op); direction 1 consumes the reversed x.
    x_both = jnp.stack([x, jnp.flip(x, axis=1)], axis=1)              # (B,2,L,D)

    # Weight preprocessing: fuse B/C projections (transposed layout),
    # precompute -exp(A_log), cast matmul weights to bf16.
    wx_bc_t = jnp.swapaxes(jnp.concatenate([wx_b, wx_c], axis=-1), 1, 2)  # (2,2N,ED)
    a_neg = -jnp.exp(a_log.astype(f32))                                # (2,N,ED)
    win_x_b, win_z_b, wout_b = (w.astype(bf16) for w in (win_x, win_z, wout))
    wx_dt_b, wx_bct_b, w_dt_b = (w.astype(bf16) for w in (wx_dt, wx_bc_t, w_dt))
    conv_w_f = conv_w.astype(f32)
    conv_b_f = conv_b.astype(f32)
    b_dt_f = b_dt.astype(f32)
    d_skip_f = d_skip.astype(f32)

    weights = (win_x_b, win_z_b, wout_b, conv_w_f, conv_b_f, wx_dt_b, wx_bct_b,
               w_dt_b, b_dt_f, a_neg, d_skip_f)

    def tied2d(arr):
        return pl.BlockSpec(arr.shape, lambda b, d, c: (0, 0))

    def per_dir(arr):
        s1, s2 = arr.shape[1], arr.shape[2]
        return pl.BlockSpec((None, s1, s2), lambda b, d, c: (d, 0, 0))

    # TODO(synk): on v7x mark these grid-invariant weight specs with
    # pipeline_mode=pl.Buffered(1) to drop the useless second pipeline buffer.
    in_specs = (
        [pl.BlockSpec((None, None, T, D), lambda b, d, c: (b, d, c, 0))]
        + [tied2d(win_x_b), tied2d(win_z_b), tied2d(wout_b)]
        + [per_dir(w) for w in (conv_w_f, conv_b_f, wx_dt_b, wx_bct_b, w_dt_b,
                                b_dt_f, a_neg, d_skip_f)]
    )
    out_spec = pl.BlockSpec((None, None, T, D), lambda b, d, c: (b, d, c, 0))

    itemsize = x.dtype.itemsize

    def nbytes(a):
        return int(a.size) * a.dtype.itemsize

    # Advisory cost estimate (both directions, actual operand dtypes).
    flops_bd = (2 * L * D * ED * 2             # in_proj (x and z)
                + 2 * K * L * ED               # depthwise conv
                + 2 * L * ED * (R + 2 * N)     # x_proj (dt + fused B/C)
                + 2 * L * R * ED               # dt_proj
                + 7 * L * N * ED               # selective scan + readout
                + 6 * L * ED                   # skip + gate
                + 2 * L * ED * D)              # out_proj
    flops = int(B * 2 * flops_bd)
    transcendentals = int(B * 2 * L * (N * ED + 3 * ED))
    weight_bytes = sum(nbytes(w) for w in weights)
    bytes_accessed = int(2 * B * 2 * L * D * itemsize + weight_bytes)

    # Explicit scoped-VMEM budget derived from the actual tile / scratch sizes.
    block_bytes = T * D * itemsize
    scratch_bytes = 4 * ((T + K - 1) * ED + N * ED + T * ED)
    need1 = 2 * weight_bytes + 4 * block_bytes + scratch_bytes
    vmem1 = int(min(64 * 2**20, max(16 * 2**20, 2 * need1)))

    y_both = pl.pallas_call(
        _mamba_chunk_kernel,
        out_shape=jax.ShapeDtypeStruct((B, 2, L, D), x.dtype),
        grid=(B, 2, nc),
        in_specs=in_specs,
        out_specs=out_spec,
        scratch_shapes=[
            pltpu.VMEM((T + K - 1, ED), f32),   # conv input + halo carry
            pltpu.VMEM((N, ED), f32),           # SSM state carry
            pltpu.VMEM((T, ED), f32),           # per-chunk scan readout
        ],
        compiler_params=pltpu.CompilerParams(
            dimension_semantics=("parallel", "parallel", "arbitrary"),
            vmem_limit_bytes=vmem1),
        cost_estimate=pl.CostEstimate(
            flops=flops, transcendentals=transcendentals,
            bytes_accessed=bytes_accessed),
    )(x_both, *weights)

    y_fwd = y_both[:, 0]
    y_bwd = jnp.flip(y_both[:, 1], axis=1)   # undo the backward-direction flip

    vmem2 = int(min(64 * 2**20, max(16 * 2**20, 16 * block_bytes)))
    out = pl.pallas_call(
        _add_ln_kernel,
        out_shape=jax.ShapeDtypeStruct((B, L, D), x.dtype),
        grid=(B, nc),
        in_specs=[pl.BlockSpec((None, T, D), lambda b, c: (b, c, 0)),
                  pl.BlockSpec((None, T, D), lambda b, c: (b, c, 0)),
                  pl.BlockSpec((None, T, D), lambda b, c: (b, c, 0)),
                  pl.BlockSpec((1, D), lambda b, c: (0, 0)),
                  pl.BlockSpec((1, D), lambda b, c: (0, 0))],
        out_specs=pl.BlockSpec((None, T, D), lambda b, c: (b, c, 0)),
        compiler_params=pltpu.CompilerParams(
            dimension_semantics=("parallel", "parallel"),
            vmem_limit_bytes=vmem2),
        cost_estimate=pl.CostEstimate(
            flops=int(10 * B * L * D), transcendentals=int(B * L),
            bytes_accessed=int(4 * B * L * D * itemsize)),
    )(x, y_fwd, y_bwd, ln_g, ln_b)
    return out


# ----------------------------- pure-JAX reference ---------------------------

_PREC = lax.Precision.HIGHEST


def _mamba_ref(x, win_x, win_z, wout, conv_w, conv_b, wx_dt, wx_b, wx_c,
               w_dt, b_dt, a_log, d_skip):
    bsz, L, _ = x.shape
    K = conv_w.shape[0]
    N = wx_b.shape[1]
    xc = jnp.matmul(x, win_x, precision=_PREC)
    z = jnp.matmul(x, win_z, precision=_PREC)
    acc = jnp.zeros_like(xc)
    for j in range(K):
        shifted = jnp.pad(xc, ((0, 0), (j, 0), (0, 0)))[:, :L, :]
        acc = acc + shifted * conv_w[K - 1 - j]
    xc = jax.nn.silu(acc + conv_b)
    dt_in = jnp.matmul(xc, wx_dt, precision=_PREC)
    bm = jnp.matmul(xc, wx_b, precision=_PREC)
    cm = jnp.matmul(xc, wx_c, precision=_PREC)
    delta = jax.nn.softplus(jnp.matmul(dt_in, w_dt, precision=_PREC) + b_dt)
    a_neg = -jnp.exp(a_log)                                        # (N, ED)
    da = jnp.exp(delta[:, :, None, :] * a_neg[None, None, :, :])   # (B,L,N,ED)
    dbx = (delta * xc)[:, :, None, :] * bm[:, :, :, None]          # (B,L,N,ED)

    def step(h, inp):
        da_t, dbx_t = inp
        h = da_t * h + dbx_t
        return h, h

    h0 = jnp.zeros((bsz, N, xc.shape[-1]), x.dtype)
    _, hs = lax.scan(step, h0,
                     (jnp.moveaxis(da, 1, 0), jnp.moveaxis(dbx, 1, 0)))
    hs = jnp.moveaxis(hs, 0, 1)                                    # (B,L,N,ED)
    y = jnp.einsum('bln,blne->ble', cm, hs, precision=_PREC)
    y = y + xc * d_skip
    y = y * jax.nn.silu(z)
    return jnp.matmul(y, wout, precision=_PREC)


def _bidir_ref(x, win_x, win_z, wout, conv_w, conv_b, wx_dt, wx_b, wx_c,
               w_dt, b_dt, a_log, d_skip, ln_g, ln_b):
    def one_dir(u, d):
        return _mamba_ref(u, win_x, win_z, wout, conv_w[d], conv_b[d],
                          wx_dt[d], wx_b[d], wx_c[d], w_dt[d], b_dt[d],
                          a_log[d], d_skip[d])

    y_f = one_dir(x, 0)
    y_b = jnp.flip(one_dir(jnp.flip(x, 1), 1), 1)
    s = x + y_f + y_b
    mu = s.mean(-1, keepdims=True)
    c = s - mu
    var = (c * c).mean(-1, keepdims=True)
    return c * lax.rsqrt(var + 1e-5) * ln_g + ln_b


if __name__ == "__main__":
    key = jax.random.PRNGKey(0)
    B, L, D = 2, 16, 32               # batch, seq, d_model (n_embed)
    E = 2                              # expand_factor
    ED = E * D                         # d_inner = 64
    N = 16                             # d_state
    R = max(1, math.ceil(D / 16))      # dt_rank ('auto') = 2
    K = 4                              # d_conv

    ks = jax.random.split(key, 12)

    def u(k, shape, fan_in):
        b = 1.0 / math.sqrt(fan_in)
        return jax.random.uniform(k, shape, jnp.float32, -b, b)

    x = jax.random.normal(ks[0], (B, L, D), jnp.float32)

    # Tied in_proj (pre-split x/z halves) and tied out_proj (bias=False).
    win_x = u(ks[1], (D, ED), D)
    win_z = u(ks[2], (D, ED), D)
    wout = u(ks[3], (ED, D), ED)

    # Per-direction params, stacked on a leading axis of 2
    # (index 0 = mixer, 1 = mixer_back).
    conv_w = u(ks[4], (2, K, ED), K)
    conv_b = u(ks[5], (2, 1, ED), K)
    wx_dt = u(ks[6], (2, ED, R), ED)
    wx_b = u(ks[7], (2, ED, N), ED)
    wx_c = u(ks[8], (2, ED, N), ED)
    w_dt = u(ks[9], (2, R, ED), R)
    b_dt = u(ks[10], (2, 1, ED), R)
    a_log = jnp.log(jnp.broadcast_to(
        jnp.arange(1, N + 1, dtype=jnp.float32)[None, :, None], (2, N, ED)))
    d_skip = jnp.ones((2, 1, ED), jnp.float32)
    ln_g = jnp.ones((1, D), jnp.float32)
    ln_b = jnp.zeros((1, D), jnp.float32)

    args = (x, win_x, win_z, wout, conv_w, conv_b, wx_dt, wx_b, wx_c,
            w_dt, b_dt, a_log, d_skip, ln_g, ln_b)

    # seq_chunk=8 -> two L-chunks, so the state/halo carry path is exercised.
    out = jax.block_until_ready(bidir_mamba_block(*args, seq_chunk=8))
    ref = _bidir_ref(*args)

    assert out.shape == (B, L, D)
    max_err = float(jnp.max(jnp.abs(out - ref)))
    # bf16 MXU operands vs f32-highest reference: allow a few 1e-3 of drift.
    assert max_err < 2e-2, f"max_err={max_err}"

    print("KERNEL_OK")
</pallas_src>

<mosaic_0001>
module attributes {stable_mosaic.version = 11 : i64} {
  func.func @_mamba_chunk_kernel(%arg0: i32, %arg1: i32, %arg2: i32, %arg3: memref<1x1x8x32xf32, #tpu.memory_space<vmem>>, %arg4: memref<32x64xbf16, #tpu.memory_space<vmem>>, %arg5: memref<32x64xbf16, #tpu.memory_space<vmem>>, %arg6: memref<64x32xbf16, #tpu.memory_space<vmem>>, %arg7: memref<1x4x64xf32, #tpu.memory_space<vmem>>, %arg8: memref<1x1x64xf32, #tpu.memory_space<vmem>>, %arg9: memref<1x64x2xbf16, #tpu.memory_space<vmem>>, %arg10: memref<1x32x64xbf16, #tpu.memory_space<vmem>>, %arg11: memref<1x2x64xbf16, #tpu.memory_space<vmem>>, %arg12: memref<1x1x64xf32, #tpu.memory_space<vmem>>, %arg13: memref<1x16x64xf32, #tpu.memory_space<vmem>>, %arg14: memref<1x1x64xf32, #tpu.memory_space<vmem>>, %arg15: memref<1x1x8x32xf32, #tpu.memory_space<vmem>>, %arg16: memref<11x64xf32, #tpu.memory_space<vmem>>, %arg17: memref<16x64xf32, #tpu.memory_space<vmem>>, %arg18: memref<8x64xf32, #tpu.memory_space<vmem>>) attributes {dimension_semantics = [#tpu.dimension_semantics<parallel>, #tpu.dimension_semantics<parallel>, #tpu.dimension_semantics<arbitrary>], iteration_bounds = array<i64: 2, 2, 2>, scalar_prefetch = 0 : i64, scratch_operands = 3 : i64, tpu.core_type = #tpu.core_type<tc>, window_params = [{transform_indices = @transform_0, window_bounds = array<i64: 1, 1, 8, 32>}, {pipeline_mode = #tpu.pipeline_mode<synchronous>, transform_indices = @transform_1, window_bounds = array<i64: 32, 64>}, {pipeline_mode = #tpu.pipeline_mode<synchronous>, transform_indices = @transform_2, window_bounds = array<i64: 32, 64>}, {pipeline_mode = #tpu.pipeline_mode<synchronous>, transform_indices = @transform_3, window_bounds = array<i64: 64, 32>}, {transform_indices = @transform_4, window_bounds = array<i64: 1, 4, 64>}, {transform_indices = @transform_5, window_bounds = array<i64: 1, 1, 64>}, {transform_indices = @transform_6, window_bounds = array<i64: 1, 64, 2>}, {transform_indices = @transform_7, window_bounds = array<i64: 1, 32, 64>}, {transform_indices = @transform_8, window_bounds = array<i64: 1, 2, 64>}, {transform_indices = @transform_9, window_bounds = array<i64: 1, 1, 64>}, {transform_indices = @transform_10, window_bounds = array<i64: 1, 16, 64>}, {transform_indices = @transform_11, window_bounds = array<i64: 1, 1, 64>}, {transform_indices = @transform_12, window_bounds = array<i64: 1, 1, 8, 32>}]} {
    %c0_i32 = arith.constant 0 : i32
    %0 = arith.cmpi eq, %arg2, %c0_i32 : i32
    %1 = arith.extui %0 : i1 to i32
    %c0_i32_0 = arith.constant 0 : i32
    %2 = arith.cmpi ne, %1, %c0_i32_0 : i32
    scf.if %2 {
      %cst_91 = arith.constant 0.000000e+00 : f32
      %232 = vector.broadcast %cst_91 : f32 to vector<16x64xf32>
      %c0_92 = arith.constant 0 : index
      %c0_93 = arith.constant 0 : index
      %233 = vector.load %arg17[%c0_92, %c0_93] : memref<16x64xf32, #tpu.memory_space<vmem>>, vector<16x64xf32>
      tpu.vector_store %arg17[%c0_92, %c0_93], %232 {strides = array<i32>} : memref<16x64xf32, #tpu.memory_space<vmem>>, vector<16x64xf32>,
      %cst_94 = arith.constant 0.000000e+00 : f32
      %234 = vector.broadcast %cst_94 : f32 to vector<3x64xf32>
      %c0_95 = arith.constant 0 : index
      %c0_96 = arith.constant 0 : index
      %235 = vector.load %arg16[%c0_95, %c0_96] : memref<11x64xf32, #tpu.memory_space<vmem>>, vector<3x64xf32>
      tpu.vector_store %arg16[%c0_95, %c0_96], %234 {strides = array<i32>} : memref<11x64xf32, #tpu.memory_space<vmem>>, vector<3x64xf32>,
    } else {
    }
    %c0 = arith.constant 0 : index
    %c0_1 = arith.constant 0 : index
    %c0_2 = arith.constant 0 : index
    %c0_3 = arith.constant 0 : index
    %3 = vector.load %arg3[%c0, %c0_1, %c0_2, %c0_3] : memref<1x1x8x32xf32, #tpu.memory_space<vmem>>, vector<1x1x8x32xf32>
    %4 = vector.shape_cast %3 : vector<1x1x8x32xf32> to vector<8x32xf32>
    %5 = arith.truncf %4 : vector<8x32xf32> to vector<8x32xbf16>
    %c0_4 = arith.constant 0 : index
    %c0_5 = arith.constant 0 : index
    %6 = vector.load %arg4[%c0_4, %c0_5] : memref<32x64xbf16, #tpu.memory_space<vmem>>, vector<32x64xbf16>
    %cst = arith.constant dense<0.000000e+00> : vector<8x64xf32>
    %7 = tpu.matmul %5, %6, %cst {dimension_numbers = #tpu.dot_dimension_numbers<[1], [0], [0], [1], [0, 0, 1, 1], [], []>} : vector<8x32xbf16>, vector<32x64xbf16>, vector<8x64xf32> -> vector<8x64xf32>
    %c0_6 = arith.constant 0 : index
    %c0_7 = arith.constant 0 : index
    %8 = vector.load %arg5[%c0_6, %c0_7] : memref<32x64xbf16, #tpu.memory_space<vmem>>, vector<32x64xbf16>
    %cst_8 = arith.constant dense<0.000000e+00> : vector<8x64xf32>
    %9 = tpu.matmul %5, %8, %cst_8 {dimension_numbers = #tpu.dot_dimension_numbers<[1], [0], [0], [1], [0, 0, 1, 1], [], []>} : vector<8x32xbf16>, vector<32x64xbf16>, vector<8x64xf32> -> vector<8x64xf32>
    %c3 = arith.constant 3 : index
    %c0_9 = arith.constant 0 : index
    %10 = vector.load %arg16[%c3, %c0_9] : memref<11x64xf32, #tpu.memory_space<vmem>>, vector<8x64xf32>
    tpu.vector_store %arg16[%c3, %c0_9], %7 {strides = array<i32>} : memref<11x64xf32, #tpu.memory_space<vmem>>, vector<8x64xf32>,
    %c0_10 = arith.constant 0 : index
    %c3_11 = arith.constant 3 : index
    %c0_12 = arith.constant 0 : index
    %11 = vector.load %arg7[%c0_10, %c3_11, %c0_12] : memref<1x4x64xf32, #tpu.memory_space<vmem>>, vector<1x1x64xf32>
    %12 = vector.shape_cast %11 : vector<1x1x64xf32> to vector<1x64xf32>
    %13 = vector.broadcast %12 : vector<1x64xf32> to vector<8x64xf32>
    %14 = arith.mulf %7, %13 : vector<8x64xf32>
    %c2 = arith.constant 2 : index
    %c0_13 = arith.constant 0 : index
    %15 = vector.load %arg16[%c2, %c0_13] : memref<11x64xf32, #tpu.memory_space<vmem>>, vector<8x64xf32>
    %c0_14 = arith.constant 0 : index
    %c2_15 = arith.constant 2 : index
    %c0_16 = arith.constant 0 : index
    %16 = vector.load %arg7[%c0_14, %c2_15, %c0_16] : memref<1x4x64xf32, #tpu.memory_space<vmem>>, vector<1x1x64xf32>
    %17 = vector.shape_cast %16 : vector<1x1x64xf32> to vector<1x64xf32>
    %18 = vector.broadcast %17 : vector<1x64xf32> to vector<8x64xf32>
    %19 = arith.mulf %15, %18 : vector<8x64xf32>
    %20 = arith.addf %14, %19 : vector<8x64xf32>
    %c1 = arith.constant 1 : index
    %c0_17 = arith.constant 0 : index
    %21 = vector.load %arg16[%c1, %c0_17] : memref<11x64xf32, #tpu.memory_space<vmem>>, vector<8x64xf32>
    %c0_18 = arith.constant 0 : index
    %c1_19 = arith.constant 1 : index
    %c0_20 = arith.constant 0 : index
    %22 = vector.load %arg7[%c0_18, %c1_19, %c0_20] : memref<1x4x64xf32, #tpu.memory_space<vmem>>, vector<1x1x64xf32>
    %23 = vector.shape_cast %22 : vector<1x1x64xf32> to vector<1x64xf32>
    %24 = vector.broadcast %23 : vector<1x64xf32> to vector<8x64xf32>
    %25 = arith.mulf %21, %24 : vector<8x64xf32>
    %26 = arith.addf %20, %25 : vector<8x64xf32>
    %c0_21 = arith.constant 0 : index
    %c0_22 = arith.constant 0 : index
    %27 = vector.load %arg16[%c0_21, %c0_22] : memref<11x64xf32, #tpu.memory_space<vmem>>, vector<8x64xf32>
    %c0_23 = arith.constant 0 : index
    %c0_24 = arith.constant 0 : index
    %c0_25 = arith.constant 0 : index
    %28 = vector.load %arg7[%c0_23, %c0_24, %c0_25] : memref<1x4x64xf32, #tpu.memory_space<vmem>>, vector<1x1x64xf32>
    %29 = vector.shape_cast %28 : vector<1x1x64xf32> to vector<1x64xf32>
    %30 = vector.broadcast %29 : vector<1x64xf32> to vector<8x64xf32>
    %31 = arith.mulf %27, %30 : vector<8x64xf32>
    %32 = arith.addf %26, %31 : vector<8x64xf32>
    %c8 = arith.constant 8 : index
    %c0_26 = arith.constant 0 : index
    %33 = vector.load %arg16[%c8, %c0_26] : memref<11x64xf32, #tpu.memory_space<vmem>>, vector<3x64xf32>
    %c0_27 = arith.constant 0 : index
    %c0_28 = arith.constant 0 : index
    %34 = vector.load %arg16[%c0_27, %c0_28] : memref<11x64xf32, #tpu.memory_space<vmem>>, vector<3x64xf32>
    tpu.vector_store %arg16[%c0_27, %c0_28], %33 {strides = array<i32>} : memref<11x64xf32, #tpu.memory_space<vmem>>, vector<3x64xf32>,
    %c0_29 = arith.constant 0 : index
    %c0_30 = arith.constant 0 : index
    %c0_31 = arith.constant 0 : index
    %35 = vector.load %arg8[%c0_29, %c0_30, %c0_31] : memref<1x1x64xf32, #tpu.memory_space<vmem>>, vector<1x1x64xf32>
    %36 = vector.shape_cast %35 : vector<1x1x64xf32> to vector<1x64xf32>
    %37 = vector.broadcast %36 : vector<1x64xf32> to vector<8x64xf32>
    %38 = arith.addf %32, %37 : vector<8x64xf32>
    %39 = arith.negf %38 : vector<8x64xf32>
    %40 = math.exp %39 : vector<8x64xf32>
    %cst_32 = arith.constant 1.000000e+00 : f32
    %41 = vector.broadcast %cst_32 : f32 to vector<8x64xf32>
    %42 = arith.addf %41, %40 : vector<8x64xf32>
    %43 = arith.divf %41, %42 : vector<8x64xf32>
    %44 = arith.mulf %38, %43 : vector<8x64xf32>
    %45 = arith.truncf %44 : vector<8x64xf32> to vector<8x64xbf16>
    %c0_33 = arith.constant 0 : index
    %c0_34 = arith.constant 0 : index
    %c0_35 = arith.constant 0 : index
    %46 = vector.load %arg9[%c0_33, %c0_34, %c0_35] : memref<1x64x2xbf16, #tpu.memory_space<vmem>>, vector<1x64x2xbf16>
    %47 = vector.shape_cast %46 : vector<1x64x2xbf16> to vector<64x2xbf16>
    %cst_36 = arith.constant dense<0.000000e+00> : vector<8x2xf32>
    %48 = tpu.matmul %45, %47, %cst_36 {dimension_numbers = #tpu.dot_dimension_numbers<[1], [0], [0], [1], [0, 0, 1, 1], [], []>} : vector<8x64xbf16>, vector<64x2xbf16>, vector<8x2xf32> -> vector<8x2xf32>
    %c0_37 = arith.constant 0 : index
    %c0_38 = arith.constant 0 : index
    %c0_39 = arith.constant 0 : index
    %49 = vector.load %arg10[%c0_37, %c0_38, %c0_39] : memref<1x32x64xbf16, #tpu.memory_space<vmem>>, vector<1x32x64xbf16>
    %50 = vector.shape_cast %49 : vector<1x32x64xbf16> to vector<32x64xbf16>
    %cst_40 = arith.constant dense<0.000000e+00> : vector<32x8xf32>
    %51 = tpu.matmul %50, %45, %cst_40 {dimension_numbers = #tpu.dot_dimension_numbers<[1], [1], [0], [0], [0, 0, 1, 0], [], []>} : vector<32x64xbf16>, vector<8x64xbf16>, vector<32x8xf32> -> vector<32x8xf32>
    %52 = vector.extract_strided_slice %51 {offsets = [0, 0], sizes = [16, 8], strides = [1, 1]} : vector<32x8xf32> to vector<16x8xf32>
    %53 = vector.extract_strided_slice %51 {offsets = [16, 0], sizes = [16, 8], strides = [1, 1]} : vector<32x8xf32> to vector<16x8xf32>
    %54 = arith.truncf %48 : vector<8x2xf32> to vector<8x2xbf16>
    %c0_41 = arith.constant 0 : index
    %c0_42 = arith.constant 0 : index
    %c0_43 = arith.constant 0 : index
    %55 = vector.load %arg11[%c0_41, %c0_42, %c0_43] : memref<1x2x64xbf16, #tpu.memory_space<vmem>>, vector<1x2x64xbf16>
    %56 = vector.shape_cast %55 : vector<1x2x64xbf16> to vector<2x64xbf16>
    %cst_44 = arith.constant dense<0.000000e+00> : vector<8x64xf32>
    %57 = tpu.matmul %54, %56, %cst_44 {dimension_numbers = #tpu.dot_dimension_numbers<[1], [0], [0], [1], [0, 0, 1, 1], [], []>} : vector<8x2xbf16>, vector<2x64xbf16>, vector<8x64xf32> -> vector<8x64xf32>
    %c0_45 = arith.constant 0 : index
    %c0_46 = arith.constant 0 : index
    %c0_47 = arith.constant 0 : index
    %58 = vector.load %arg12[%c0_45, %c0_46, %c0_47] : memref<1x1x64xf32, #tpu.memory_space<vmem>>, vector<1x1x64xf32>
    %59 = vector.shape_cast %58 : vector<1x1x64xf32> to vector<1x64xf32>
    %60 = vector.broadcast %59 : vector<1x64xf32> to vector<8x64xf32>
    %61 = arith.addf %57, %60 : vector<8x64xf32>
    %cst_48 = arith.constant 0.000000e+00 : f32
    %62 = vector.broadcast %cst_48 : f32 to vector<8x64xf32>
    %63 = arith.maximumf %61, %62 : vector<8x64xf32>
    %64 = math.absf %61 : vector<8x64xf32>
    %cst_49 = arith.constant 0.000000e+00 : f32
    %65 = vector.broadcast %cst_49 : f32 to vector<8x64xf32>
    %66 = arith.subf %65, %64 : vector<8x64xf32>
    %67 = math.exp %66 : vector<8x64xf32>
    %cst_50 = arith.constant 1.000000e+00 : f32
    %68 = vector.broadcast %cst_50 : f32 to vector<8x64xf32>
    %69 = arith.addf %68, %67 : vector<8x64xf32>
    %70 = math.log %69 : vector<8x64xf32>
    %71 = arith.addf %63, %70 : vector<8x64xf32>
    %c0_51 = arith.constant 0 : index
    %c0_52 = arith.constant 0 : index
    %c0_53 = arith.constant 0 : index
    %72 = vector.load %arg13[%c0_51, %c0_52, %c0_53] : memref<1x16x64xf32, #tpu.memory_space<vmem>>, vector<1x16x64xf32>
    %73 = vector.shape_cast %72 : vector<1x16x64xf32> to vector<16x64xf32>
    %74 = arith.mulf %71, %44 : vector<8x64xf32>
    %c0_54 = arith.constant 0 : index
    %c0_55 = arith.constant 0 : index
    %75 = vector.load %arg17[%c0_54, %c0_55] : memref<16x64xf32, #tpu.memory_space<vmem>>, vector<16x64xf32>
    %76 = vector.extract_strided_slice %71 {offsets = [0, 0], sizes = [1, 64], strides = [1, 1]} : vector<8x64xf32> to vector<1x64xf32>
    %77 = vector.broadcast %76 : vector<1x64xf32> to vector<16x64xf32>
    %78 = arith.mulf %77, %73 : vector<16x64xf32>
    %79 = math.exp %78 : vector<16x64xf32>
    %80 = arith.mulf %79, %75 : vector<16x64xf32>
    %81 = vector.extract_strided_slice %74 {offsets = [0, 0], sizes = [1, 64], strides = [1, 1]} : vector<8x64xf32> to vector<1x64xf32>
    %82 = vector.extract_strided_slice %52 {offsets = [0, 0], sizes = [16, 1], strides = [1, 1]} : vector<16x8xf32> to vector<16x1xf32>
    %83 = vector.broadcast %81 : vector<1x64xf32> to vector<16x64xf32>
    %84 = vector.broadcast %82 : vector<16x1xf32> to vector<16x64xf32>
    %85 = arith.mulf %83, %84 : vector<16x64xf32>
    %86 = arith.addf %80, %85 : vector<16x64xf32>
    %87 = vector.extract_strided_slice %53 {offsets = [0, 0], sizes = [16, 1], strides = [1, 1]} : vector<16x8xf32> to vector<16x1xf32>
    %88 = vector.broadcast %87 : vector<16x1xf32> to vector<16x64xf32>
    %89 = arith.mulf %88, %86 : vector<16x64xf32>
    %cst_56 = arith.constant dense<0.000000e+00> : vector<64xf32>
    %90 = vector.multi_reduction <add>, %89, %cst_56 [0] : vector<16x64xf32> to vector<64xf32>
    %91 = vector.shape_cast %90 : vector<64xf32> to vector<1x64xf32>
    %c0_57 = arith.constant 0 : index
    %c0_58 = arith.constant 0 : index
    %92 = vector.load %arg18[%c0_57, %c0_58] : memref<8x64xf32, #tpu.memory_space<vmem>>, vector<1x64xf32>
    tpu.vector_store %arg18[%c0_57, %c0_58], %91 {strides = array<i32>} : memref<8x64xf32, #tpu.memory_space<vmem>>, vector<1x64xf32>,
    %93 = vector.extract_strided_slice %71 {offsets = [1, 0], sizes = [1, 64], strides = [1, 1]} : vector<8x64xf32> to vector<1x64xf32>
    %94 = vector.broadcast %93 : vector<1x64xf32> to vector<16x64xf32>
    %95 = arith.mulf %94, %73 : vector<16x64xf32>
    %96 = math.exp %95 : vector<16x64xf32>
    %97 = arith.mulf %96, %86 : vector<16x64xf32>
    %98 = vector.extract_strided_slice %74 {offsets = [1, 0], sizes = [1, 64], strides = [1, 1]} : vector<8x64xf32> to vector<1x64xf32>
    %99 = vector.extract_strided_slice %52 {offsets = [0, 1], sizes = [16, 1], strides = [1, 1]} : vector<16x8xf32> to vector<16x1xf32>
    %100 = vector.broadcast %98 : vector<1x64xf32> to vector<16x64xf32>
    %101 = vector.broadcast %99 : vector<16x1xf32> to vector<16x64xf32>
    %102 = arith.mulf %100, %101 : vector<16x64xf32>
    %103 = arith.addf %97, %102 : vector<16x64xf32>
    %104 = vector.extract_strided_slice %53 {offsets = [0, 1], sizes = [16, 1], strides = [1, 1]} : vector<16x8xf32> to vector<16x1xf32>
    %105 = vector.broadcast %104 : vector<16x1xf32> to vector<16x64xf32>
    %106 = arith.mulf %105, %103 : vector<16x64xf32>
    %cst_59 = arith.constant dense<0.000000e+00> : vector<64xf32>
    %107 = vector.multi_reduction <add>, %106, %cst_59 [0] : vector<16x64xf32> to vector<64xf32>
    %108 = vector.shape_cast %107 : vector<64xf32> to vector<1x64xf32>
    %c1_60 = arith.constant 1 : index
    %c0_61 = arith.constant 0 : index
    %109 = vector.load %arg18[%c1_60, %c0_61] : memref<8x64xf32, #tpu.memory_space<vmem>>, vector<1x64xf32>
    tpu.vector_store %arg18[%c1_60, %c0_61], %108 {strides = array<i32>} : memref<8x64xf32, #tpu.memory_space<vmem>>, vector<1x64xf32>,
    %110 = vector.extract_strided_slice %71 {offsets = [2, 0], sizes = [1, 64], strides = [1, 1]} : vector<8x64xf32> to vector<1x64xf32>
    %111 = vector.broadcast %110 : vector<1x64xf32> to vector<16x64xf32>
    %112 = arith.mulf %111, %73 : vector<16x64xf32>
    %113 = math.exp %112 : vector<16x64xf32>
    %114 = arith.mulf %113, %103 : vector<16x64xf32>
    %115 = vector.extract_strided_slice %74 {offsets = [2, 0], sizes = [1, 64], strides = [1, 1]} : vector<8x64xf32> to vector<1x64xf32>
    %116 = vector.extract_strided_slice %52 {offsets = [0, 2], sizes = [16, 1], strides = [1, 1]} : vector<16x8xf32> to vector<16x1xf32>
    %117 = vector.broadcast %115 : vector<1x64xf32> to vector<16x64xf32>
    %118 = vector.broadcast %116 : vector<16x1xf32> to vector<16x64xf32>
    %119 = arith.mulf %117, %118 : vector<16x64xf32>
    %120 = arith.addf %114, %119 : vector<16x64xf32>
    %121 = vector.extract_strided_slice %53 {offsets = [0, 2], sizes = [16, 1], strides = [1, 1]} : vector<16x8xf32> to vector<16x1xf32>
    %122 = vector.broadcast %121 : vector<16x1xf32> to vector<16x64xf32>
    %123 = arith.mulf %122, %120 : vector<16x64xf32>
    %cst_62 = arith.constant dense<0.000000e+00> : vector<64xf32>
    %124 = vector.multi_reduction <add>, %123, %cst_62 [0] : vector<16x64xf32> to vector<64xf32>
    %125 = vector.shape_cast %124 : vector<64xf32> to vector<1x64xf32>
    %c2_63 = arith.constant 2 : index
    %c0_64 = arith.constant 0 : index
    %126 = vector.load %arg18[%c2_63, %c0_64] : memref<8x64xf32, #tpu.memory_space<vmem>>, vector<1x64xf32>
    tpu.vector_store %arg18[%c2_63, %c0_64], %125 {strides = array<i32>} : memref<8x64xf32, #tpu.memory_space<vmem>>, vector<1x64xf32>,
    %127 = vector.extract_strided_slice %71 {offsets = [3, 0], sizes = [1, 64], strides = [1, 1]} : vector<8x64xf32> to vector<1x64xf32>
    %128 = vector.broadcast %127 : vector<1x64xf32> to vector<16x64xf32>
    %129 = arith.mulf %128, %73 : vector<16x64xf32>
    %130 = math.exp %129 : vector<16x64xf32>
    %131 = arith.mulf %130, %120 : vector<16x64xf32>
    %132 = vector.extract_strided_slice %74 {offsets = [3, 0], sizes = [1, 64], strides = [1, 1]} : vector<8x64xf32> to vector<1x64xf32>
    %133 = vector.extract_strided_slice %52 {offsets = [0, 3], sizes = [16, 1], strides = [1, 1]} : vector<16x8xf32> to vector<16x1xf32>
    %134 = vector.broadcast %132 : vector<1x64xf32> to vector<16x64xf32>
    %135 = vector.broadcast %133 : vector<16x1xf32> to vector<16x64xf32>
    %136 = arith.mulf %134, %135 : vector<16x64xf32>
    %137 = arith.addf %131, %136 : vector<16x64xf32>
    %138 = vector.extract_strided_slice %53 {offsets = [0, 3], sizes = [16, 1], strides = [1, 1]} : vector<16x8xf32> to vector<16x1xf32>
    %139 = vector.broadcast %138 : vector<16x1xf32> to vector<16x64xf32>
    %140 = arith.mulf %139, %137 : vector<16x64xf32>
    %cst_65 = arith.constant dense<0.000000e+00> : vector<64xf32>
    %141 = vector.multi_reduction <add>, %140, %cst_65 [0] : vector<16x64xf32> to vector<64xf32>
    %142 = vector.shape_cast %141 : vector<64xf32> to vector<1x64xf32>
    %c3_66 = arith.constant 3 : index
    %c0_67 = arith.constant 0 : index
    %143 = vector.load %arg18[%c3_66, %c0_67] : memref<8x64xf32, #tpu.memory_space<vmem>>, vector<1x64xf32>
    tpu.vector_store %arg18[%c3_66, %c0_67], %142 {strides = array<i32>} : memref<8x64xf32, #tpu.memory_space<vmem>>, vector<1x64xf32>,
    %144 = vector.extract_strided_slice %71 {offsets = [4, 0], sizes = [1, 64], strides = [1, 1]} : vector<8x64xf32> to vector<1x64xf32>
    %145 = vector.broadcast %144 : vector<1x64xf32> to vector<16x64xf32>
    %146 = arith.mulf %145, %73 : vector<16x64xf32>
    %147 = math.exp %146 : vector<16x64xf32>
    %148 = arith.mulf %147, %137 : vector<16x64xf32>
    %149 = vector.extract_strided_slice %74 {offsets = [4, 0], sizes = [1, 64], strides = [1, 1]} : vector<8x64xf32> to vector<1x64xf32>
    %150 = vector.extract_strided_slice %52 {offsets = [0, 4], sizes = [16, 1], strides = [1, 1]} : vector<16x8xf32> to vector<16x1xf32>
    %151 = vector.broadcast %149 : vector<1x64xf32> to vector<16x64xf32>
    %152 = vector.broadcast %150 : vector<16x1xf32> to vector<16x64xf32>
    %153 = arith.mulf %151, %152 : vector<16x64xf32>
    %154 = arith.addf %148, %153 : vector<16x64xf32>
    %155 = vector.extract_strided_slice %53 {offsets = [0, 4], sizes = [16, 1], strides = [1, 1]} : vector<16x8xf32> to vector<16x1xf32>
    %156 = vector.broadcast %155 : vector<16x1xf32> to vector<16x64xf32>
    %157 = arith.mulf %156, %154 : vector<16x64xf32>
    %cst_68 = arith.constant dense<0.000000e+00> : vector<64xf32>
    %158 = vector.multi_reduction <add>, %157, %cst_68 [0] : vector<16x64xf32> to vector<64xf32>
    %159 = vector.shape_cast %158 : vector<64xf32> to vector<1x64xf32>
    %c4 = arith.constant 4 : index
    %c0_69 = arith.constant 0 : index
    %160 = vector.load %arg18[%c4, %c0_69] : memref<8x64xf32, #tpu.memory_space<vmem>>, vector<1x64xf32>
    tpu.vector_store %arg18[%c4, %c0_69], %159 {strides = array<i32>} : memref<8x64xf32, #tpu.memory_space<vmem>>, vector<1x64xf32>,
    %161 = vector.extract_strided_slice %71 {offsets = [5, 0], sizes = [1, 64], strides = [1, 1]} : vector<8x64xf32> to vector<1x64xf32>
    %162 = vector.broadcast %161 : vector<1x64xf32> to vector<16x64xf32>
    %163 = arith.mulf %162, %73 : vector<16x64xf32>
    %164 = math.exp %163 : vector<16x64xf32>
    %165 = arith.mulf %164, %154 : vector<16x64xf32>
    %166 = vector.extract_strided_slice %74 {offsets = [5, 0], sizes = [1, 64], strides = [1, 1]} : vector<8x64xf32> to vector<1x64xf32>
    %167 = vector.extract_strided_slice %52 {offsets = [0, 5], sizes = [16, 1], strides = [1, 1]} : vector<16x8xf32> to vector<16x1xf32>
    %168 = vector.broadcast %166 : vector<1x64xf32> to vector<16x64xf32>
    %169 = vector.broadcast %167 : vector<16x1xf32> to vector<16x64xf32>
    %170 = arith.mulf %168, %169 : vector<16x64xf32>
    %171 = arith.addf %165, %170 : vector<16x64xf32>
    %172 = vector.extract_strided_slice %53 {offsets = [0, 5], sizes = [16, 1], strides = [1, 1]} : vector<16x8xf32> to vector<16x1xf32>
    %173 = vector.broadcast %172 : vector<16x1xf32> to vector<16x64xf32>
    %174 = arith.mulf %173, %171 : vector<16x64xf32>
    %cst_70 = arith.constant dense<0.000000e+00> : vector<64xf32>
    %175 = vector.multi_reduction <add>, %174, %cst_70 [0] : vector<16x64xf32> to vector<64xf32>
    %176 = vector.shape_cast %175 : vector<64xf32> to vector<1x64xf32>
    %c5 = arith.constant 5 : index
    %c0_71 = arith.constant 0 : index
    %177 = vector.load %arg18[%c5, %c0_71] : memref<8x64xf32, #tpu.memory_space<vmem>>, vector<1x64xf32>
    tpu.vector_store %arg18[%c5, %c0_71], %176 {strides = array<i32>} : memref<8x64xf32, #tpu.memory_space<vmem>>, vector<1x64xf32>,
    %178 = vector.extract_strided_slice %71 {offsets = [6, 0], sizes = [1, 64], strides = [1, 1]} : vector<8x64xf32> to vector<1x64xf32>
    %179 = vector.broadcast %178 : vector<1x64xf32> to vector<16x64xf32>
    %180 = arith.mulf %179, %73 : vector<16x64xf32>
    %181 = math.exp %180 : vector<16x64xf32>
    %182 = arith.mulf %181, %171 : vector<16x64xf32>
    %183 = vector.extract_strided_slice %74 {offsets = [6, 0], sizes = [1, 64], strides = [1, 1]} : vector<8x64xf32> to vector<1x64xf32>
    %184 = vector.extract_strided_slice %52 {offsets = [0, 6], sizes = [16, 1], strides = [1, 1]} : vector<16x8xf32> to vector<16x1xf32>
    %185 = vector.broadcast %183 : vector<1x64xf32> to vector<16x64xf32>
    %186 = vector.broadcast %184 : vector<16x1xf32> to vector<16x64xf32>
    %187 = arith.mulf %185, %186 : vector<16x64xf32>
    %188 = arith.addf %182, %187 : vector<16x64xf32>
    %189 = vector.extract_strided_slice %53 {offsets = [0, 6], sizes = [16, 1], strides = [1, 1]} : vector<16x8xf32> to vector<16x1xf32>
    %190 = vector.broadcast %189 : vector<16x1xf32> to vector<16x64xf32>
    %191 = arith.mulf %190, %188 : vector<16x64xf32>
    %cst_72 = arith.constant dense<0.000000e+00> : vector<64xf32>
    %192 = vector.multi_reduction <add>, %191, %cst_72 [0] : vector<16x64xf32> to vector<64xf32>
    %193 = vector.shape_cast %192 : vector<64xf32> to vector<1x64xf32>
    %c6 = arith.constant 6 : index
    %c0_73 = arith.constant 0 : index
    %194 = vector.load %arg18[%c6, %c0_73] : memref<8x64xf32, #tpu.memory_space<vmem>>, vector<1x64xf32>
    tpu.vector_store %arg18[%c6, %c0_73], %193 {strides = array<i32>} : memref<8x64xf32, #tpu.memory_space<vmem>>, vector<1x64xf32>,
    %195 = vector.extract_strided_slice %71 {offsets = [7, 0], sizes = [1, 64], strides = [1, 1]} : vector<8x64xf32> to vector<1x64xf32>
    %196 = vector.broadcast %195 : vector<1x64xf32> to vector<16x64xf32>
    %197 = arith.mulf %196, %73 : vector<16x64xf32>
    %198 = math.exp %197 : vector<16x64xf32>
    %199 = arith.mulf %198, %188 : vector<16x64xf32>
    %200 = vector.extract_strided_slice %74 {offsets = [7, 0], sizes = [1, 64], strides = [1, 1]} : vector<8x64xf32> to vector<1x64xf32>
    %201 = vector.extract_strided_slice %52 {offsets = [0, 7], sizes = [16, 1], strides = [1, 1]} : vector<16x8xf32> to vector<16x1xf32>
    %202 = vector.broadcast %200 : vector<1x64xf32> to vector<16x64xf32>
    %203 = vector.broadcast %201 : vector<16x1xf32> to vector<16x64xf32>
    %204 = arith.mulf %202, %203 : vector<16x64xf32>
    %205 = arith.addf %199, %204 : vector<16x64xf32>
    %206 = vector.extract_strided_slice %53 {offsets = [0, 7], sizes = [16, 1], strides = [1, 1]} : vector<16x8xf32> to vector<16x1xf32>
    %207 = vector.broadcast %206 : vector<16x1xf32> to vector<16x64xf32>
    %208 = arith.mulf %207, %205 : vector<16x64xf32>
    %cst_74 = arith.constant dense<0.000000e+00> : vector<64xf32>
    %209 = vector.multi_reduction <add>, %208, %cst_74 [0] : vector<16x64xf32> to vector<64xf32>
    %210 = vector.shape_cast %209 : vector<64xf32> to vector<1x64xf32>
    %c7 = arith.constant 7 : index
    %c0_75 = arith.constant 0 : index
    %211 = vector.load %arg18[%c7, %c0_75] : memref<8x64xf32, #tpu.memory_space<vmem>>, vector<1x64xf32>
    tpu.vector_store %arg18[%c7, %c0_75], %210 {strides = array<i32>} : memref<8x64xf32, #tpu.memory_space<vmem>>, vector<1x64xf32>,
    %c0_76 = arith.constant 0 : index
    %c0_77 = arith.constant 0 : index
    %212 = vector.load %arg17[%c0_76, %c0_77] : memref<16x64xf32, #tpu.memory_space<vmem>>, vector<16x64xf32>
    tpu.vector_store %arg17[%c0_76, %c0_77], %205 {strides = array<i32>} : memref<16x64xf32, #tpu.memory_space<vmem>>, vector<16x64xf32>,
    %c0_78 = arith.constant 0 : index
    %c0_79 = arith.constant 0 : index
    %213 = vector.load %arg18[%c0_78, %c0_79] : memref<8x64xf32, #tpu.memory_space<vmem>>, vector<8x64xf32>
    %c0_80 = arith.constant 0 : index
    %c0_81 = arith.constant 0 : index
    %c0_82 = arith.constant 0 : index
    %214 = vector.load %arg14[%c0_80, %c0_81, %c0_82] : memref<1x1x64xf32, #tpu.memory_space<vmem>>, vector<1x1x64xf32>
    %215 = vector.shape_cast %214 : vector<1x1x64xf32> to vector<1x64xf32>
    %216 = vector.broadcast %215 : vector<1x64xf32> to vector<8x64xf32>
    %217 = arith.mulf %44, %216 : vector<8x64xf32>
    %218 = arith.addf %213, %217 : vector<8x64xf32>
    %219 = arith.negf %9 : vector<8x64xf32>
    %220 = math.exp %219 : vector<8x64xf32>
    %cst_83 = arith.constant 1.000000e+00 : f32
    %221 = vector.broadcast %cst_83 : f32 to vector<8x64xf32>
    %222 = arith.addf %221, %220 : vector<8x64xf32>
    %223 = arith.divf %221, %222 : vector<8x64xf32>
    %224 = arith.mulf %9, %223 : vector<8x64xf32>
    %225 = arith.mulf %218, %224 : vector<8x64xf32>
    %226 = arith.truncf %225 : vector<8x64xf32> to vector<8x64xbf16>
    %c0_84 = arith.constant 0 : index
    %c0_85 = arith.constant 0 : index
    %227 = vector.load %arg6[%c0_84, %c0_85] : memref<64x32xbf16, #tpu.memory_space<vmem>>, vector<64x32xbf16>
    %cst_86 = arith.constant dense<0.000000e+00> : vector<8x32xf32>
    %228 = tpu.matmul %226, %227, %cst_86 {dimension_numbers = #tpu.dot_dimension_numbers<[1], [0], [0], [1], [0, 0, 1, 1], [], []>} : vector<8x64xbf16>, vector<64x32xbf16>, vector<8x32xf32> -> vector<8x32xf32>
    %c0_87 = arith.constant 0 : index
    %c0_88 = arith.constant 0 : index
    %c0_89 = arith.constant 0 : index
    %c0_90 = arith.constant 0 : index
    %229 = vector.load %arg15[%c0_87, %c0_88, %c0_89, %c0_90] : memref<1x1x8x32xf32, #tpu.memory_space<vmem>>, vector<1x1x8x32xf32>
    %230 = vector.shape_cast %229 : vector<1x1x8x32xf32> to vector<8x32xf32>
    %231 = vector.shape_cast %228 : vector<8x32xf32> to vector<1x1x8x32xf32>
    tpu.vector_store %arg15[%c0_87, %c0_88, %c0_89, %c0_90], %231 {strides = array<i32>} : memref<1x1x8x32xf32, #tpu.memory_space<vmem>>, vector<1x1x8x32xf32>,
    return
  }
  func.func @transform_0(%arg0: i32, %arg1: i32, %arg2: i32) -> (i32, i32, i32, i32) {
    %c0_i32 = arith.constant 0 : i32
    %c0_i32_0 = arith.constant 0 : i32
    return %arg0, %arg1, %arg2, %c0_i32 : i32, i32, i32, i32
  }
  func.func @transform_1(%arg0: i32, %arg1: i32, %arg2: i32) -> (i32, i32) {
    %c0_i32 = arith.constant 0 : i32
    %c0_i32_0 = arith.constant 0 : i32
    %c0_i32_1 = arith.constant 0 : i32
    return %c0_i32, %c0_i32_0 : i32, i32
  }
  func.func @transform_2(%arg0: i32, %arg1: i32, %arg2: i32) -> (i32, i32) {
    %c0_i32 = arith.constant 0 : i32
    %c0_i32_0 = arith.constant 0 : i32
    %c0_i32_1 = arith.constant 0 : i32
    return %c0_i32, %c0_i32_0 : i32, i32
  }
  func.func @transform_3(%arg0: i32, %arg1: i32, %arg2: i32) -> (i32, i32) {
    %c0_i32 = arith.constant 0 : i32
    %c0_i32_0 = arith.constant 0 : i32
    %c0_i32_1 = arith.constant 0 : i32
    return %c0_i32, %c0_i32_0 : i32, i32
  }
  func.func @transform_4(%arg0: i32, %arg1: i32, %arg2: i32) -> (i32, i32, i32) {
    %c0_i32 = arith.constant 0 : i32
    %c0_i32_0 = arith.constant 0 : i32
    %c0_i32_1 = arith.constant 0 : i32
    return %arg1, %c0_i32, %c0_i32_0 : i32, i32, i32
  }
  func.func @transform_5(%arg0: i32, %arg1: i32, %arg2: i32) -> (i32, i32, i32) {
    %c0_i32 = arith.constant 0 : i32
    %c0_i32_0 = arith.constant 0 : i32
    %c0_i32_1 = arith.constant 0 : i32
    return %arg1, %c0_i32, %c0_i32_0 : i32, i32, i32
  }
  func.func @transform_6(%arg0: i32, %arg1: i32, %arg2: i32) -> (i32, i32, i32) {
    %c0_i32 = arith.constant 0 : i32
    %c0_i32_0 = arith.constant 0 : i32
    %c0_i32_1 = arith.constant 0 : i32
    return %arg1, %c0_i32, %c0_i32_0 : i32, i32, i32
  }
  func.func @transform_7(%arg0: i32, %arg1: i32, %arg2: i32) -> (i32, i32, i32) {
    %c0_i32 = arith.constant 0 : i32
    %c0_i32_0 = arith.constant 0 : i32
    %c0_i32_1 = arith.constant 0 : i32
    return %arg1, %c0_i32, %c0_i32_0 : i32, i32, i32
  }
  func.func @transform_8(%arg0: i32, %arg1: i32, %arg2: i32) -> (i32, i32, i32) {
    %c0_i32 = arith.constant 0 : i32
    %c0_i32_0 = arith.constant 0 : i32
    %c0_i32_1 = arith.constant 0 : i32
    return %arg1, %c0_i32, %c0_i32_0 : i32, i32, i32
  }
  func.func @transform_9(%arg0: i32, %arg1: i32, %arg2: i32) -> (i32, i32, i32) {
    %c0_i32 = arith.constant 0 : i32
    %c0_i32_0 = arith.constant 0 : i32
    %c0_i32_1 = arith.constant 0 : i32
    return %arg1, %c0_i32, %c0_i32_0 : i32, i32, i32
  }
  func.func @transform_10(%arg0: i32, %arg1: i32, %arg2: i32) -> (i32, i32, i32) {
    %c0_i32 = arith.constant 0 : i32
    %c0_i32_0 = arith.constant 0 : i32
    %c0_i32_1 = arith.constant 0 : i32
    return %arg1, %c0_i32, %c0_i32_0 : i32, i32, i32
  }
  func.func @transform_11(%arg0: i32, %arg1: i32, %arg2: i32) -> (i32, i32, i32) {
    %c0_i32 = arith.constant 0 : i32
    %c0_i32_0 = arith.constant 0 : i32
    %c0_i32_1 = arith.constant 0 : i32
    return %arg1, %c0_i32, %c0_i32_0 : i32, i32, i32
  }
  func.func @transform_12(%arg0: i32, %arg1: i32, %arg2: i32) -> (i32, i32, i32, i32) {
    %c0_i32 = arith.constant 0 : i32
    %c0_i32_0 = arith.constant 0 : i32
    return %arg0, %arg1, %arg2, %c0_i32 : i32, i32, i32, i32
  }
}

module attributes {stable_mosaic.version = 11 : i64} {
  func.func @_add_ln_kernel(%arg0: i32, %arg1: i32, %arg2: memref<1x8x32xf32, #tpu.memory_space<vmem>>, %arg3: memref<1x8x32xf32, #tpu.memory_space<vmem>>, %arg4: memref<1x8x32xf32, #tpu.memory_space<vmem>>, %arg5: memref<1x32xf32, #tpu.memory_space<vmem>>, %arg6: memref<1x32xf32, #tpu.memory_space<vmem>>, %arg7: memref<1x8x32xf32, #tpu.memory_space<vmem>>) attributes {dimension_semantics = [#tpu.dimension_semantics<parallel>, #tpu.dimension_semantics<parallel>], iteration_bounds = array<i64: 2, 2>, scalar_prefetch = 0 : i64, scratch_operands = 0 : i64, tpu.core_type = #tpu.core_type<tc>, window_params = [{transform_indices = @transform_0, window_bounds = array<i64: 1, 8, 32>}, {transform_indices = @transform_1, window_bounds = array<i64: 1, 8, 32>}, {transform_indices = @transform_2, window_bounds = array<i64: 1, 8, 32>}, {pipeline_mode = #tpu.pipeline_mode<synchronous>, transform_indices = @transform_3, window_bounds = array<i64: 1, 32>}, {pipeline_mode = #tpu.pipeline_mode<synchronous>, transform_indices = @transform_4, window_bounds = array<i64: 1, 32>}, {transform_indices = @transform_5, window_bounds = array<i64: 1, 8, 32>}]} {
    %c0 = arith.constant 0 : index
    %c0_0 = arith.constant 0 : index
    %c0_1 = arith.constant 0 : index
    %0 = vector.load %arg2[%c0, %c0_0, %c0_1] : memref<1x8x32xf32, #tpu.memory_space<vmem>>, vector<1x8x32xf32>
    %1 = vector.shape_cast %0 : vector<1x8x32xf32> to vector<8x32xf32>
    %c0_2 = arith.constant 0 : index
    %c0_3 = arith.constant 0 : index
    %c0_4 = arith.constant 0 : index
    %2 = vector.load %arg3[%c0_2, %c0_3, %c0_4] : memref<1x8x32xf32, #tpu.memory_space<vmem>>, vector<1x8x32xf32>
    %3 = vector.shape_cast %2 : vector<1x8x32xf32> to vector<8x32xf32>
    %4 = arith.addf %1, %3 : vector<8x32xf32>
    %c0_5 = arith.constant 0 : index
    %c0_6 = arith.constant 0 : index
    %c0_7 = arith.constant 0 : index
    %5 = vector.load %arg4[%c0_5, %c0_6, %c0_7] : memref<1x8x32xf32, #tpu.memory_space<vmem>>, vector<1x8x32xf32>
    %6 = vector.shape_cast %5 : vector<1x8x32xf32> to vector<8x32xf32>
    %7 = arith.addf %4, %6 : vector<8x32xf32>
    %cst = arith.constant dense<0.000000e+00> : vector<8xf32>
    %8 = vector.multi_reduction <add>, %7, %cst [1] : vector<8x32xf32> to vector<8xf32>
    %9 = vector.shape_cast %8 : vector<8xf32> to vector<8x1xf32>
    %cst_8 = arith.constant 3.200000e+01 : f32
    %10 = vector.broadcast %cst_8 : f32 to vector<8x1xf32>
    %11 = arith.divf %9, %10 : vector<8x1xf32>
    %12 = vector.broadcast %11 : vector<8x1xf32> to vector<8x32xf32>
    %13 = arith.subf %7, %12 : vector<8x32xf32>
    %14 = arith.mulf %13, %13 : vector<8x32xf32>
    %cst_9 = arith.constant dense<0.000000e+00> : vector<8xf32>
    %15 = vector.multi_reduction <add>, %14, %cst_9 [1] : vector<8x32xf32> to vector<8xf32>
    %16 = vector.shape_cast %15 : vector<8xf32> to vector<8x1xf32>
    %cst_10 = arith.constant 3.200000e+01 : f32
    %17 = vector.broadcast %cst_10 : f32 to vector<8x1xf32>
    %18 = arith.divf %16, %17 : vector<8x1xf32>
    %cst_11 = arith.constant 9.99999974E-6 : f32
    %19 = vector.broadcast %cst_11 : f32 to vector<8x1xf32>
    %20 = arith.addf %18, %19 : vector<8x1xf32>
    %21 = math.rsqrt %20 : vector<8x1xf32>
    %22 = vector.broadcast %21 : vector<8x1xf32> to vector<8x32xf32>
    %23 = arith.mulf %13, %22 : vector<8x32xf32>
    %c0_12 = arith.constant 0 : index
    %c0_13 = arith.constant 0 : index
    %24 = vector.load %arg5[%c0_12, %c0_13] : memref<1x32xf32, #tpu.memory_space<vmem>>, vector<1x32xf32>
    %25 = vector.broadcast %24 : vector<1x32xf32> to vector<8x32xf32>
    %26 = arith.mulf %23, %25 : vector<8x32xf32>
    %c0_14 = arith.constant 0 : index
    %c0_15 = arith.constant 0 : index
    %27 = vector.load %arg6[%c0_14, %c0_15] : memref<1x32xf32, #tpu.memory_space<vmem>>, vector<1x32xf32>
    %28 = vector.broadcast %27 : vector<1x32xf32> to vector<8x32xf32>
    %29 = arith.addf %26, %28 : vector<8x32xf32>
    %c0_16 = arith.constant 0 : index
    %c0_17 = arith.constant 0 : index
    %c0_18 = arith.constant 0 : index
    %30 = vector.load %arg7[%c0_16, %c0_17, %c0_18] : memref<1x8x32xf32, #tpu.memory_space<vmem>>, vector<1x8x32xf32>
    %31 = vector.shape_cast %30 : vector<1x8x32xf32> to vector<8x32xf32>
    %32 = vector.shape_cast %29 : vector<8x32xf32> to vector<1x8x32xf32>
    tpu.vector_store %arg7[%c0_16, %c0_17, %c0_18], %32 {strides = array<i32>} : memref<1x8x32xf32, #tpu.memory_space<vmem>>, vector<1x8x32xf32>,
    return
  }
  func.func @transform_0(%arg0: i32, %arg1: i32) -> (i32, i32, i32) {
    %c0_i32 = arith.constant 0 : i32
    %c0_i32_0 = arith.constant 0 : i32
    return %arg0, %arg1, %c0_i32 : i32, i32, i32
  }
  func.func @transform_1(%arg0: i32, %arg1: i32) -> (i32, i32, i32) {
    %c0_i32 = arith.constant 0 : i32
    %c0_i32_0 = arith.constant 0 : i32
    return %arg0, %arg1, %c0_i32 : i32, i32, i32
  }
  func.func @transform_2(%arg0: i32, %arg1: i32) -> (i32, i32, i32) {
    %c0_i32 = arith.constant 0 : i32
    %c0_i32_0 = arith.constant 0 : i32
    return %arg0, %arg1, %c0_i32 : i32, i32, i32
  }
  func.func @transform_3(%arg0: i32, %arg1: i32) -> (i32, i32) {
    %c0_i32 = arith.constant 0 : i32
    %c0_i32_0 = arith.constant 0 : i32
    %c0_i32_1 = arith.constant 0 : i32
    return %c0_i32, %c0_i32_0 : i32, i32
  }
  func.func @transform_4(%arg0: i32, %arg1: i32) -> (i32, i32) {
    %c0_i32 = arith.constant 0 : i32
    %c0_i32_0 = arith.constant 0 : i32
    %c0_i32_1 = arith.constant 0 : i32
    return %c0_i32, %c0_i32_0 : i32, i32
  }
  func.func @transform_5(%arg0: i32, %arg1: i32) -> (i32, i32, i32) {
    %c0_i32 = arith.constant 0 : i32
    %c0_i32_0 = arith.constant 0 : i32
    return %arg0, %arg1, %c0_i32 : i32, i32, i32
  }
}

</mosaic_0001>

<bundles_post_ra>
// kernel: bidir_mamba_block.3
= control target key start
LH: loop header
LB: loop body
LE: loop exit
PB: predicated region body
PF: predicated region fallthrough
CT: control target
= control target key end

     0   :  { %10 = vsyncpa [#allocation3], 0  ;;  %s848_s0 = inlined_call_operand.vmem [shape: f32[2,16,32], index: 0, kind: input, shape index: {}]   ;;  %s849_s1 = inlined_call_operand.vmem [shape: f32[2,16,32], index: 1, kind: input, shape index: {}]   ;;  %s850_s2 = inlined_call_operand.vmem [shape: f32[2,16,32], index: 2, kind: input, shape index: {}]   ;;  %s851_s3 = inlined_call_operand.vmem [shape: f32[1,32], index: 3, kind: input, shape index: {}]   ;;  %s852_s4 = inlined_call_operand.vmem [shape: f32[1,32], index: 4, kind: input, shape index: {}]   ;;  %s853_s5 = inlined_call_operand.hbm [shape: f32[2,16,32], index: 5, kind: output, shape index: {}]  }
   0x1   :  { %12 = vsyncpa [#allocation3 + $0x1], 0  ;;  %s696_s18 = smov 0   ;;  %s698_s19 = smov 0  }
   0x2   :  { %s700_s20 = smov 0   ;;  %s702_s21 = smov 0  }
   0x3   :  { %s704_s22 = smov 0   ;;  %s706_s23 = smov 0  }
   0x4   :  { %s708_s24 = smov 0   ;;  %s710_s25 = smov 0  }
   0x5 LB: > { %s477_s26 = sadd.s32 4294967295, %s663_s25   ;;  %s478_s27 = sadd.s32 4294967294, %s663_s25   ;;  %s663_s25 = sphi %s710_s25, %s18_s25   ;;  %s659_s24 = sphi %s708_s24, %s868_s24   ;;  %s655_s23 = sphi %s706_s23, %s867_s23   ;;  %s651_s22 = sphi %s704_s22, %s866_s22   ;;  %s647_s21 = sphi %s702_s21, %s865_s21   ;;  %s643_s20 = sphi %s700_s20, %s864_s20   ;;  %s639_s19 = sphi %s698_s19, %s863_s19   ;;  %s635_s18 = sphi %s696_s18, %s862_s18  }
   0x6   : > { %s27_s28 = sadd.s32 1, %s655_s23  ;;  %s30_s29 = sadd.s32 1, %s659_s24 }
   0x7   : > { %p28_p0 = scmp.ge.s32.totalorder %s27_s28, 2  ;;  %p175_p1 = scmp.ne.s32.totalorder %s643_s20, %s639_s19 }
   0x8   : > { %p176_p2 = scmp.eq.s32.totalorder %s477_s26, 3  ;;  %p181_p5 = scmp.ne.s32.totalorder %s639_s19, %s635_s18 }
   0x9   : > { %s870_s28 = smov (%p28_p0, %s27_s28), 0  ;;  %s872_s29 = smov (!%p28_p0, %s30_s29), %s659_s24 }
   0xa   : > { %856 = sst [smem:[#allocation5_spill]] %s870_s28  ;;  %s161_s30 = ssub.s32 %s655_s23, %s870_s28 }
   0xb   : > { %p747_p3 = por %p176_p2, %p175_p1  ;;  %p32_p4 = scmp.ge.s32.totalorder %s872_s29, 2 }
   0xc   : > { %p182_p6 = scmp.eq.s32.totalorder %s478_s27, 3  ;;  %p481_p7 = scmp.ge.s32.totalorder %s663_s25, 1 }
   0xd   : > { %s874_s29 = smov (%p32_p4, %s872_s29), 0  ;;  %p239_p9 = scmp.lt.s32.totalorder %s663_s25, 5 }
   0xe   : > { %858 = sst [smem:[#allocation6_spill]] %s874_s29  ;;  %p756_p8 = por %p182_p6, %p181_p5 }
   0xf   : > { %s160_s8 = ssub.s32 %s659_s24, %s874_s29  ;;  %s165_s9 = sadd.s32 1, %s643_s20 }
  0x10   : > { %s162_s10 = sor.u32 %s161_s30, %s160_s8  ;;  %p240_p10 = pnand %p481_p7, %p239_p9 }
  0x11   : > { %p163_p11 = scmp.eq.s32.totalorder %s162_s10, 0  ;;  %p286_p12 = scmp.lt.s32.totalorder (!%p240_p10), %s651_s22, 1  ;;  %vm315_vm0 = vcmask (!%p240_p10), 261120   ;;  %v489_v15 = vld [vmem:[%s851_s3] ss:$0 sm:$0xff] (!%p240_p10) }
  0x12   : > { %243 = sbr.rel (%p240_p10) target bundleno = 364 (0x16c), region = 40  ;;  %p288_p13 = scmp.lt.s32.totalorder (!%p240_p10), %s647_s21, 1  ;;  %v490_v17 = vld [vmem:[%s852_s4] ss:$0 sm:$0xff] (!%p240_p10) }
  0x13   : > { %s765_s11 = scalar_select %p163_p11, %s643_s20, %s165_s9  }
  0x14   : > { %s283_s29 = sand.u32 (!%p240_p10), 1, %s639_s19  }
  0x19   : > { %s287_s12 = scalar_select %p286_p12, %s651_s22, 1 }
  0x1a   : > { %s289_s13 = scalar_select %p288_p13, %s647_s21, 1 }
  0x1b   : > { %s483_s14 = sshll.u32 %s287_s12, 1  ;;  %s492_s12 = sshll.u32 %s651_s22, 1 }
  0x1c   : > { %s291_s15 = sadd.s32 %s483_s14, %s289_s13  ;;  %s359_s13 = sadd.s32 %s647_s21, %s492_s12 }
  0x1d   : > { %s484_s16 = sshll.u32 %s291_s15, 3  ;;  %s493_s26 = sshll.u32 %s359_s13, 7 }
  0x1e   : > { %s293_s27 = scalar_lea.vmem %s848_s0, %s484_s16  ;;  %s301_s9 = scalar_lea.vmem %s849_s1, %s484_s16 }
  0x1f   : > { %s309_s28 = scalar_lea.vmem %s850_s2, %s484_s16  ;;  %v310_v0 = vld [vmem:[%s293_s27] sm:$0xff]  ;;  %s794_s21 = scalar_lea.hbm %s853_s5, %s493_s26 }
  0x20   : > { %v311_v1 = vld [vmem:[%s301_s9] sm:$0xff]  ;;  %s348_s22 = scalar_lea.sflag [#allocation3], %s283_s29 }
  0x21   : > { %v312_v2 = vadd.f32 %v311_v1, %v310_v0  ;;  %v313_v3 = vld [vmem:[%s309_s28] sm:$0xff]  ;;  %s482_s28 = sshll.u32 %s283_s29, 3 }
  0x22   : > { %s285_s27 = scalar_lea.vmem [#allocation2], %s482_s28  ;;  %s665_s28 = smov [#allocation2]  }
  0x23   : > { %v314_v4 = vadd.f32 %v313_v3, %v312_v2  ;;  %s363_s30 = sshll.u32 %s285_s27, 4  ;;  %s573_s12 = sshll.u32 %s665_s28, 4  ;;  %s796_s30 = int_to_ptr.vmem [resolvable:$true] %s363_s30  ;;  %s574_s12 = int_to_ptr.vmem [resolvable:$false] %s573_s12 }
  0x24   : > { %s569_s10 = scalar_lea.vmem %s796_s30, 128  ;;  %s575_s13 = scalar_lea.vmem %s574_s12, 256 }
  0x25   : > { %v316_v5 = vsel %vm315_vm0, %v314_v4, 0.0  ;;  %p570_p0 = scmp.ne.s32.totalorder %s796_s30, %s569_s10  ;;  %p576_p4 = scmp.lt.s32.totalorder %s796_s30, %s574_s12 }
  0x26   : > { %317 = vadd.xlane.f32.xlu0 %v316_v5  ;;  %p577_p5 = scmp.lt.s32.totalorder %s575_s13, %s569_s10 }
  0x27   : > { %p571_p1 = pnand %p570_p0, %p747_p3 }
  0x28   : > { %p578_p6 = por %p577_p5, %p576_p4 }
  0x29   : > { %p572_p2 = pneg %p571_p1 }
  0x2b   : > { %p579_p7 = pnand %p578_p6, %p572_p2 }
  0xb3   : > { %v318_v6 = vpop.xlane.xlu0 %317 }
  0xb4   : > { %v320_v7 = vmul.f32 0.03125, %v318_v6 }
  0xb6   : > { %v321_v8 = vsub.f32 %v314_v4, %v320_v7 }
  0xb8   : > { %v322_v9 = vmul.f32 %v321_v8, %v321_v8 }
  0xba   : > { %v323_v10 = vsel %vm315_vm0, %v322_v9, 0.0 }
  0xbb   : > { %324 = vadd.xlane.f32.xlu0 %v323_v10 }
 0x148   : > { %v325_v11 = vpop.xlane.xlu0 %324 }
 0x149   : > { %v326_v12 = vmul.f32 0.03125, %v325_v11 }
 0x14b   : > { %v327_v13 = vadd.f32 1e-05, %v326_v12 }
 0x14d   : > { %567 = vrsqrt.f32 %v327_v13 }
 0x157   : > { %v568_v14 = vpop.eup %567 }
 0x158   : > { %v329_v16 = vmul.f32 %v568_v14, %v321_v8 }
 0x15a   : > { %v337_v18 = vmul.f32 %v489_v15, %v329_v16 }
 0x15c   : > { %v345_v19 = vadd.f32 %v490_v17, %v337_v18 }
 0x15e   : > { %346 = vst.msk [vmem:[%s285_s27] sm:$0xff] %vm315_vm0, %v345_v19 }
 0x15f   : > { %582 = shalt.err (!%p579_p7)
}
 0x160   : > { %s583_s29 = scalar_lea.hbm %s794_s21, 128  ;;  %s587_s16 = scalar_lea.hbm %s853_s5, 512 }
 0x161   : > { %p584_p9 = scmp.ne.s32.totalorder %s794_s21, %s583_s29  ;;  %p588_p12 = scmp.lt.u32.totalorder %s794_s21, %s853_s5 }
 0x162   : > { %p589_p13 = scmp.lt.u32.totalorder %s587_s16, %s583_s29  ;;  %p591_p1 = scmp.lt.u32.totalorder %s583_s29, %s794_s21 }
 0x163   : > { %p585_p10 = pnand %p584_p9, %p747_p3 }
 0x164   : > { %p590_p0 = por %p589_p13, %p588_p12 }
 0x165   : > { %p586_p11 = pneg %p585_p10 }
 0x166   : > { %p592_p2 = por %p591_p1, %p590_p0 }
 0x168   : > { %p593_p4 = pnand %p592_p2, %p586_p11 }
 0x16a   : > { %596 = shalt.err (!%p593_p4)
}
 0x16b   : > { %496 = dma.vmem_to_hbm [thread:$0]  (%p747_p3), %s796_s30, 128, %s794_s21, %s348_s22  }
 0x16c PF: > { %p502_p5 = scmp.ge.s32.totalorder %s663_s25, 2  ;;  %s375_s27 = sand.u32 1, %s635_s18  }
 0x16d   : > { %s376_s8 = scalar_lea.sflag [#allocation3], %s375_s27 }
 0x16e   : > { %p499_p6 = pnand %p502_p5, %p756_p8 }
 0x170   : > { %630 = dma.done.wait (!%p499_p6), %s376_s8, 128  }
 0x171   : > { %632 = vsyncadd (!%p499_p6), %s376_s8, 4294967168  ;;  %s18_s25 = sadd.s32 1, %s663_s25   ;;  %s860_s6 = sld [smem:[#allocation5_spill]] }
 0x172   : > { %p15_p7 = scmp.ge.s32.totalorder %s18_s25, 6   ;;  %s861_s30 = sld [smem:[#allocation6_spill]] }
 0x173   : > { %s862_s18 = smov %s639_s19  ;;  %s863_s19 = smov %s643_s20 }
 0x174   : > { %s864_s20 = smov %s765_s11  ;;  %s865_s21 = smov %s655_s23 }
 0x175   : > { %s866_s22 = smov %s659_s24  ;;  %17 = sbr.rel (!%p15_p7) target bundleno = 5 (0x5), region = 81 }
 0x177   : > { %s867_s23 = smov %s860_s6 }
 0x178   : > { %s868_s24 = smov %s861_s30 }
 0x17c   :  { %381 = vsyncpa [#allocation3], 1 }
 0x17d   :  { %383 = vsyncpa [#allocation3 + $0x1], 1 }

// kernel: bidir_mamba_block.2
= control target key start
LH: loop header
LB: loop body
LE: loop exit
PB: predicated region body
PF: predicated region fallthrough
CT: control target
= control target key end

     0   :  { %s2100_s21 = smov 0   ;;  %s2102_s22 = smov 0   ;;  %s2512_s0 = inlined_call_operand.vmem [shape: f32[2,2,16,32], index: 0, kind: input, shape index: {}]   ;;  %s2513_s1 = inlined_call_operand.vmem [shape: bf16[32,64], index: 1, kind: input, shape index: {}]   ;;  %s2514_s2 = inlined_call_operand.vmem [shape: bf16[32,64], index: 2, kind: input, shape index: {}]   ;;  %s2515_s3 = inlined_call_operand.vmem [shape: bf16[64,32], index: 3, kind: input, shape index: {}]   ;;  %s2516_s4 = inlined_call_operand.vmem [shape: f32[2,4,64], index: 4, kind: input, shape index: {}]   ;;  %s2517_s5 = inlined_call_operand.vmem [shape: f32[2,1,64], index: 5, kind: input, shape index: {}]   ;;  %s2518_s6 = inlined_call_operand.vmem [shape: bf16[2,64,2], index: 6, kind: input, shape index: {}]   ;;  %s2519_s7 = inlined_call_operand.vmem [shape: bf16[2,32,64], index: 7, kind: input, shape index: {}]   ;;  %s2520_s8 = inlined_call_operand.vmem [shape: bf16[2,2,64], index: 8, kind: input, shape index: {}]   ;;  %s2521_s9 = inlined_call_operand.vmem [shape: f32[2,1,64], index: 9, kind: input, shape index: {}]   ;;  %s2522_s10 = inlined_call_operand.vmem [shape: f32[2,16,64], index: 10, kind: input, shape index: {}]   ;;  %s2523_s11 = inlined_call_operand.vmem [shape: f32[2,1,64], index: 11, kind: input, shape index: {}]   ;;  %s2524_s12 = inlined_call_operand.vmem [shape: f32[2,2,16,32], index: 12, kind: output, shape index: {}]  }
   0x1   :  { %2532 = sst [smem:[#allocation12_spill]] %s2512_s0  ;;  %s2104_s23 = smov 0  }
   0x2   :  { %2533 = sst [smem:[#allocation13_spill]] %s2513_s1  ;;  %s2106_s24 = smov 0  }
   0x3   :  { %2534 = sst [smem:[#allocation14_spill]] %s2514_s2  ;;  %s2108_s25 = smov 0  }
   0x4   :  { %2535 = sst [smem:[#allocation15_spill]] %s2515_s3  ;;  %s2110_s26 = smov 0  }
   0x5   :  { %2536 = sst [smem:[#allocation16_spill]] %s2516_s4  ;;  %s2112_s27 = smov 0  }
   0x6 LB: > { %2537 = sst [smem:[#allocation5_spill]] %s2010_s24  ;;  %s34_s28 = sadd.s32 1, %s2010_s24  ;;  %s2022_s27 = sphi %s2112_s27, %s22_s27   ;;  %s2018_s26 = sphi %s2110_s26, %s2556_s26   ;;  %s2014_s25 = sphi %s2108_s25, %s2555_s25   ;;  %s2010_s24 = sphi %s2106_s24, %s2554_s24   ;;  %s2006_s23 = sphi %s2104_s23, %s2553_s23   ;;  %s2002_s22 = sphi %s2102_s22, %s2552_s22   ;;  %s1998_s21 = sphi %s2100_s21, %s2551_s21  }
   0x7   : > { %2538 = sst [smem:[#allocation6_spill]] %s2014_s25  ;;  %p35_p0 = scmp.ge.s32.totalorder %s34_s28, 2 }
   0x8   : > { %2539 = sst [smem:[#allocation7_spill]] %s2018_s26  ;;  %s37_s29 = sadd.s32 1, %s2014_s25 }
   0x9   : > { %2540 = sst [smem:[#allocation8_spill]] %s2022_s27  ;;  %p1691_p1 = scmp.ge.s32.totalorder %s2022_s27, 1 }
   0xa   : > { %p467_p2 = scmp.lt.s32.totalorder %s2022_s27, 9  ;;  %s2558_s28 = smov (%p35_p0, %s34_s28), 0 }
   0xb   : > { %2541 = sst [smem:[#allocation9_spill]] %s2558_s28  ;;  %s2560_s29 = smov (!%p35_p0, %s37_s29), %s2014_s25 }
   0xc   : > { %p468_p3 = pnand %p1691_p1, %p467_p2  ;;  %p39_p4 = scmp.ge.s32.totalorder %s2560_s29, 2 }
   0xd   : > { %s41_s30 = sadd.s32 1, %s2018_s26  ;;  %p554_p6 = scmp.lt.s32.totalorder (!%p468_p3), %s2006_s23, 1 }
   0xe   : > { %s2562_s29 = smov (%p39_p4, %s2560_s29), 0  ;;  %s2564_s30 = smov (!%p39_p4, %s41_s30), %s2018_s26 }
   0xf   : > { %2542 = sst [smem:[#allocation10_spill]] %s2562_s29  ;;  %p43_p5 = scmp.ge.s32.totalorder %s2564_s30, 2 }
  0x10   : > { %471 = sbr.rel (%p468_p3) target bundleno = 1072 (0x430), region = 68  ;;  %p556_p7 = scmp.lt.s32.totalorder (!%p468_p3), %s2002_s22, 1 }
  0x11   : > { %s2566_s30 = smov (%p43_p5, %s2564_s30), 0  ;;  %p558_p8 = scmp.lt.s32.totalorder (!%p468_p3), %s1998_s21, 1 }
  0x12   : > { %2543 = sst [smem:[#allocation11_spill]] %s2566_s30  ;;  %s2544_s4 = sld [smem:[#allocation16_spill]] (!%p468_p3) }
  0x13   : > { %s2545_s0 = sld [smem:[#allocation12_spill]] (!%p468_p3)  ;;  %p1705_p9 = scmp.ne.s32.totalorder (!%p468_p3), %s1998_s21, 0 }
  0x17   : > { %s2568_s23 = smov (!%p554_p6, %s2006_s23), 1  ;;  %s2570_s22 = smov (!%p556_p7, %s2002_s22), 1 }
  0x18   : > { %s559_s13 = scalar_select %p558_p8, %s1998_s21, 1 }
  0x19   : > { %s1692_s14 = sshll.u32 %s2570_s22, 1  ;;  %s1693_s15 = sshll.u32 %s2568_s23, 2  ;;  %vm614_vm0 = vcmask (!%p1705_p9), 523264   ;;  %vm617_vm1 = vcmask (!%p1705_p9), 518144   ;;  %v2024_v0 = vmov (!%p1705_p9), 0.0  }
  0x1a   : > { %s561_s16 = sadd.s32 %s1692_s14, %s559_s13  ;;  %s1695_s17 = sshll.u32 %s2570_s22, 2  ;;  %615 = vst.msk [vmem:[#allocation3] sm:$0xff] (!%p1705_p9), %vm614_vm0, %v2024_v0  ;;  %616 = vst.msk [vmem:[#allocation3 + $0x8] sm:$0xff] (!%p1705_p9), %vm614_vm0, %v2024_v0 }
  0x1b   : > { %s563_s18 = sadd.s32 %s1693_s15, %s561_s16  ;;  %s2153_s30 = scalar_lea.vmem %s2544_s4, %s1695_s17  ;;  %618 = vst.msk [vmem:[#allocation2] sm:$0x7] (!%p1705_p9), %vm617_vm1, %v2024_v0 }
  0x1c   : > { %s1694_s29 = sshll.u32 %s563_s18, 3  ;;  %s1738_s2 = sshll.u32 %s2570_s22, 5 }
  0x1d   : > { %s565_s3 = scalar_lea.vmem %s2545_s0, %s1694_s29  ;;  %s2166_s13 = scalar_lea.vmem %s2518_s6, %s1738_s2 }
  0x1e   : > { %s1739_s14 = sshll.u32 %s2570_s22, 4  ;;  %s585_s26 = scalar_lea.vmem %s2520_s8, %s2570_s22 }
  0x1f   : > { %s2172_s17 = scalar_lea.vmem %s2519_s7, %s1739_s14  ;;  %s588_s24 = scalar_lea.vmem %s2521_s9, %s2570_s22 }
  0x20   : > { %s2185_s1 = scalar_lea.vmem %s2522_s10, %s1739_s14  ;;  %s596_s0 = scalar_lea.vmem %s2523_s11, %s2570_s22 }
  0x21   : > { %s2194_s4 = scalar_lea.vmem %s2524_s12, %s1694_s29  ;;  %613 = sbr.rel (%p1705_p9) target bundleno = 40 (0x28), region = 72 }
  0x28 PF: > { %s2546_s18 = sld [smem:[#allocation13_spill]]  ;;  %v2025_v2 = vmov 0.0   ;;  %vm2026_vm2 = vmmov 0   ;;  %v619_v4 = vld [vmem:[%s565_s3] sm:$0xff]  ;;  %vm637_vm3 = vcmask 261120   ;;  %s2547_s28 = sld [smem:[#allocation14_spill]] }
  0x29   : > { %1762 = vmatprep.subr.bf16.mxu1 %v2025_v2  ;;  %1778 = vmatprep.subr.bf16.mxu0 %v2025_v2  ;;  %v620_v5 = vpack.c.bf16 %v619_v4, %v619_v4  ;;  %v1912_v6 = vld [vmem:[%s2166_s13] sm:$0xff]   ;;  %v1914_v8 = vld [vmem:[%s2166_s13 + $0x8] sm:$0xff]   ;;  %v1916_v10 = vld [vmem:[%s2166_s13 + $0x10] sm:$0xff]   ;;  %vm737_vm4 = vcmask 523264   ;;  %vm770_vm5 = vcmask 518144   ;;  %s2548_s23 = scalar_lea.vmem %s2517_s5, %s2570_s22  ;;  %vm945_vm6 = vcmask 1040384  }
  0x2a   : > { %1766 = vmatprep.mubr.msk.bf16.mxu1 %vm2026_vm2, %v2025_v2  ;;  %1786 = vmatprep.mubr.msk.bf16.mxu0 %vm2026_vm2, %v2025_v2  ;;  %v1917_v11 = vld [vmem:[%s2166_s13 + $0x18] sm:$0xff]   ;;  %v1918_v12 = vld [vmem:[%s2172_s17] sm:$0xff]   ;;  %v1919_v42 = vld [vmem:[%s2172_s17 + $0x8] sm:$0xff]   ;;  %v2027_v46 = vmov 1   ;;  %v2028_v49 = vmov 0   ;;  %vm941_vm7 = vcmask 15360  }
  0x2b   : > { %1779 = vmatpush3.bf16.msra.mxu0 %v1912_v6  ;;  %v1712_v17 = vld [vmem:[%s2153_s30 + $0x3] ss:$0 sm:$0xff]  ;;  %v1713_v18 = vld [vmem:[%s2153_s30 + $0x2] ss:$0 sm:$0xff]  ;;  %v1714_v19 = vld [vmem:[%s2153_s30 + $0x1] ss:$0 sm:$0xff]  ;;  %1883 = vset.pattern.permute.xlu1 %v2027_v46 }
  0x2c   : > { %1780 = vmatprep.subr.bf16.mxu0 %v2025_v2  ;;  %v1715_v26 = vld [vmem:[%s2153_s30] ss:$0 sm:$0xff]  ;;  %1882 = vset.pattern.permute.xlu0 %v2028_v49  ;;  %v2029_v59 = vmov 2   ;;  %v2030_v60 = vmov 4   ;;  %v2031_v61 = vmov 5   ;;  %v2032_v62 = vmov 3  }
  0x2d   : > { %v1716_v31 = vld [vmem:[%s2548_s23] ss:$0 sm:$0xff]  ;;  %v2033_v63 = vmov 6   ;;  %v2034_v0 = vmov 7   ;;  %s2549_s16 = sld [smem:[#allocation15_spill]]  ;;  %vm1054_vm8 = vcmask 516096  }
  0x2e   : > { %v1910_v1 = vld [vmem:[%s2546_s18] sm:$0xff]   ;;  %v1911_v3 = vld [vmem:[%s2546_s18 + $0x8] sm:$0xff]  }
  0x2f   : > { %1763 = vmatpush3.bf16.msra.mxu1 %v1910_v1  ;;  %v1913_v7 = vld [vmem:[%s2547_s28] sm:$0xff]   ;;  %1781 = vmatpush3.bf16.msra.mxu0 %v1914_v8  ;;  %v1915_v9 = vld [vmem:[%s2547_s28 + $0x8] sm:$0xff]  }
  0x30   : > { %1764 = vmatprep.subr.bf16.mxu1 %v2025_v2  ;;  %1782 = vmatprep.subr.bf16.mxu0 %v2025_v2  ;;  %v933_v41 = vld [vmem:[%s585_s26] sm:$0x1] }
  0x31   : > { %v947_v43 = vsel %vm945_vm6, %v933_v41, 0 }
  0x33   : > { %1765 = vmatpush3.bf16.msra.mxu1 %v1911_v3  ;;  %1783 = vmatpush3.bf16.msra.mxu0 %v1916_v10  ;;  %v1921_v6 = vld [vmem:[%s2549_s16 + $0x8] sm:$0xff]   ;;  %v1922_v8 = vld [vmem:[%s2549_s16 + $0x10] sm:$0xff]   ;;  %v1923_v10 = vld [vmem:[%s2549_s16 + $0x18] sm:$0xff]  }
  0x34   : > { %1770 = vmatprep.subr.bf16.mxu1 %v2025_v2  ;;  %1784 = vmatprep.subr.bf16.mxu0 %v2025_v2 }
  0x36   : > { %1767 = vmatmul.mubr.msk.bf16.vlgmr.msra.gmra.mrb[0].mxu1 %vm637_vm3, %v620_v5 }
  0x37   : > { %1774 = vmatprep.mubr.msk.bf16.mxu1 %vm2026_vm2, %v2025_v2  ;;  %1771 = vmatpush3.bf16.msra.mxu1 %v1913_v7 }
  0x38   : > { %1772 = vmatprep.subr.bf16.mxu1 %v2025_v2  ;;  %1785 = vmatpush3.bf16.msra.mxu0 %v1917_v11 }
  0x39   : > { %1802 = vmatprep.subr.bf16.mxu0 %v2025_v2 }
  0x3b   : > { %1773 = vmatpush3.bf16.msra.mxu1 %v1915_v9 }
  0x3e   : > { %1775 = vmatmul.mubr.msk.bf16.vlgmr.msra.gmra.mrb[4].mxu1 %vm637_vm3, %v620_v5  ;;  %v1920_v5 = vld [vmem:[%s2549_s16] sm:$0xff]  }
  0x3f   : > { %1792 = vmatprep.mubr.msk.bf16.mxu1 %vm737_vm4, %v1918_v12 }
 0x109   : > { %v675_v13 = vpop.f32.mrb[0].mxu1 }
 0x10a   : > { %738 = vst.msk [vmem:[#allocation2 + $0x3] sm:$0xff] %vm737_vm4, %v675_v13  ;;  %v1768_v14 = vpop.f32.mrb[1].mxu1  ;;  %v744_v23 = vmul.f32 %v1712_v17, %v675_v13  ;;  %v1727_v13 = vld [vmem:[%s588_s24] ss:$0 sm:$0xff] }
 0x10b   : > { %v678_v15 = vpop.f32.mrb[2].mxu1 }
 0x10c   : > { %v1769_v16 = vpop.f32.mrb[3].mxu1 }
 0x111   : > { %v745_v20 = vld [vmem:[#allocation2 + $0x2] sm:$0xff]  ;;  %v2261_v44 = vpop.f32.mrb[4].mxu1 }
 0x112   : > { %v753_v21 = vld [vmem:[#allocation2 + $0x1] sm:$0xff]  ;;  %v751_v24 = vmul.f32 %v1713_v18, %v745_v20  ;;  %v1776_v45 = vpop.f32.mrb[5].mxu1 }
 0x113   : > { %v761_v22 = vld [vmem:[#allocation2] sm:$0xff]  ;;  %v769_v25 = vld [vmem:[#allocation2 + $0x8] sm:$0x7]  ;;  %v759_v28 = vmul.f32 %v1714_v19, %v753_v21  ;;  %v734_v47 = vpop.f32.mrb[6].mxu1 }
 0x114   : > { %771 = vst.msk [vmem:[#allocation2] sm:$0x7] %vm770_vm5, %v769_v25  ;;  %v752_v27 = vadd.f32 %v751_v24, %v744_v23  ;;  %v767_v30 = vmul.f32 %v1715_v26, %v761_v22  ;;  %v1777_v48 = vpop.f32.mrb[7].mxu1  ;;  %v2344_v47 = vld [vmem:[%s2185_s1 + $0x8] sm:$0xff] }
 0x116   : > { %v760_v29 = vadd.f32 %v759_v28, %v752_v27 }
 0x118   : > { %v768_v32 = vadd.f32 %v767_v30, %v760_v29 }
 0x11a   : > { %v779_v33 = vadd.f32 %v1716_v31, %v768_v32  ;;  %v1003_v31 = vlaneseq }
 0x11c   : > { %v1717_v34 = vmul.f32 -1.442695, %v779_v33 }
 0x11e   : > { %1924 = vpow2.f32 %v1717_v34  ;;  %v2331_v34 = vshrl.u32 %v1003_v31, 7 }
 0x120   : > { %v1058_v41 = vsub.s32 1, %v2331_v34  ;;  %v1106_v45 = vsub.s32 2, %v2331_v34 }
 0x128   : > { %v1925_v35 = vpop.eup %1924 }
 0x129   : > { %v783_v36 = vadd.f32 1.0, %v1925_v35 }
 0x12b   : > { %1926 = vrcp.f32 %v783_v36 }
 0x135   : > { %v1927_v37 = vpop.eup %1926 }
 0x136   : > { %v2242_v38 = vmul.f32 %v1927_v37, %v779_v33 }
 0x138   : > { %v787_v39 = vpack.c.bf16 %v2242_v38, %v2242_v38 }
 0x13a   : > { %1787 = vmatmul.mubr.msk.bf16.vlgmr.msra.gmra.mrb[0].mxu0 %vm737_vm4, %v787_v39  ;;  %1814 = vmatprep.subr.msk.bf16.mxu1 %vm737_vm4, %v787_v39  ;;  %v821_v40 = vsel %vm737_vm4, %v787_v39, 0 }
 0x13b   : > { %1791 = vmatpush3.bf16.xpose.msra.mxu1 %v821_v40  ;;  %1810 = vmatprep.mubr.msk.bf16.mxu0 %vm2026_vm2, %v2025_v2  ;;  %v1005_v40 = vsub.s32 0, %v2331_v34 }
 0x13c   : > { %1796 = vmatprep.subr.bf16.mxu1 %v2025_v2  ;;  %1803 = vmatpush3.bf16.msra.mxu0 %v1920_v5 }
 0x13d   : > { %1804 = vmatprep.subr.bf16.mxu0 %v2025_v2 }
 0x140   : > { %1805 = vmatpush3.bf16.msra.mxu0 %v1921_v6  ;;  %v1250_v6 = vsub.s32 5, %v2331_v34 }
 0x141   : > { %1806 = vmatprep.subr.bf16.mxu0 %v2025_v2 }
 0x142   : > { %1793 = vmatmul.mubr.msk.bf16.vlgmr.msra.gmra.mrb[8].mxu1 %vm737_vm4, %v1919_v42 }
 0x143   : > { %1797 = vmatpush3.bf16.msra.mxu1 %v947_v43  ;;  %1798 = vmatprep.mubr.msk.bf16.mxu1 %vm2026_vm2, %v2025_v2 }
 0x144   : > { %1807 = vmatpush3.bf16.msra.mxu0 %v1922_v8 }
 0x145   : > { %1808 = vmatprep.subr.bf16.mxu0 %v2025_v2 }
 0x148   : > { %1809 = vmatpush3.bf16.msra.mxu0 %v1923_v10 }
 0x20d   : > { %v857_v50 = vpop.f32.mrb[0].mxu0 }
 0x20e   : > { %v932_v51 = vpack.c.bf16 %v857_v50, %v857_v50  ;;  %v1788_v52 = vpop.f32.mrb[1].mxu0  ;;  %v1154_v50 = vsub.s32 3, %v2331_v34 }
 0x20f   : > { %v860_v53 = vpop.f32.mrb[2].mxu0 }
 0x210   : > { %v1789_v54 = vpop.f32.mrb[3].mxu0  ;;  %1799 = vmatmul.mubr.msk.bf16.vlgmr.msra.gmra.mrb[12].mxu1 %vm941_vm7, %v932_v51 }
 0x215   : > { %v2264_v55 = vpop.f32.mrb[8].mxu1 }
 0x216   : > { %1085 = vperm.xlu1 %1883, %v2264_v55   ;;  %v917_v56 = vpop.f32.mrb[9].mxu1  ;;  %1035 = vperm.xlu0 %1882, %v2264_v55  }
 0x217   : > { %v1795_v57 = vpop.f32.mrb[10].mxu1 }
 0x218   : > { %v920_v58 = vpop.f32.mrb[11].mxu1 }
 0x21a   : > { %1884 = vset.pattern.permute.xlu1 %v2029_v59  ;;  %1021 = vperm.xlu0 %1882, %v917_v56  }
 0x21b   : > { %1133 = vperm.xlu1 %1884, %v2264_v55  }
 0x21e   : > { %1887 = vset.pattern.permute.xlu0 %v2029_v59 }
 0x21f   : > { %1885 = vset.pattern.permute.xlu1 %v2030_v60  ;;  %1121 = vperm.xlu0 %1887, %v917_v56  }
 0x220   : > { %1229 = vperm.xlu1 %1885, %v2264_v55  }
 0x223   : > { %1890 = vset.pattern.permute.xlu0 %v2031_v61 }
 0x224   : > { %1886 = vset.pattern.permute.xlu1 %v2027_v46  ;;  %1265 = vperm.xlu0 %1890, %v917_v56  }
 0x225   : > { %1073 = vperm.xlu1 %1886, %v917_v56  }
 0x228   : > { %1894 = vset.pattern.permute.xlu0 %v2027_v46 }
 0x229   : > { %1888 = vset.pattern.permute.xlu1 %v2032_v62  ;;  %1089 = vperm.xlu0 %1894, %v1795_v57  }
 0x22a   : > { %1169 = vperm.xlu1 %1888, %v917_v56  }
 0x22d   : > { %1897 = vset.pattern.permute.xlu0 %v2030_v60 }
 0x22e   : > { %1889 = vset.pattern.permute.xlu1 %v2030_v60  ;;  %1233 = vperm.xlu0 %1897, %v1795_v57  }
 0x22f   : > { %1217 = vperm.xlu1 %1889, %v917_v56  }
 0x232   : > { %1898 = vset.pattern.permute.xlu0 %v2028_v49 }
 0x233   : > { %1891 = vset.pattern.permute.xlu1 %v2033_v63  ;;  %1026 = vperm.xlu0 %1898, %v920_v58  }
 0x234   : > { %1313 = vperm.xlu1 %1891, %v917_v56  }
 0x237   : > { %1899 = vset.pattern.permute.xlu0 %v2032_v62 }
 0x238   : > { %1892 = vset.pattern.permute.xlu1 %v2034_v0  ;;  %1181 = vperm.xlu0 %1899, %v2264_v55  }
 0x239   : > { %1361 = vperm.xlu1 %1892, %v917_v56  }
 0x23c   : > { %1173 = vperm.xlu0 %1899, %v920_v58  }
 0x23d   : > { %1893 = vset.pattern.permute.xlu1 %v2028_v49 }
 0x23e   : > { %1040 = vperm.xlu1 %1893, %v1795_v57  }
 0x240   : > { %1904 = vset.pattern.permute.xlu0 %v2033_v63 }
 0x241   : > { %1325 = vperm.xlu0 %1904, %v2264_v55  }
 0x242   : > { %1895 = vset.pattern.permute.xlu1 %v2029_v59 }
 0x243   : > { %1137 = vperm.xlu1 %1895, %v1795_v57  }
 0x245   : > { %1317 = vperm.xlu0 %1904, %v920_v58  }
 0x247   : > { %1896 = vset.pattern.permute.xlu1 %v2032_v62 }
 0x248   : > { %1185 = vperm.xlu1 %1896, %v1795_v57  }
 0x249   : > { %1909 = vset.pattern.permute.xlu0 %v2034_v0 }
 0x24a   : > { %1377 = vperm.xlu0 %1909, %v1795_v57  }
 0x24c   : > { %1900 = vset.pattern.permute.xlu1 %v2031_v61 }
 0x24d   : > { %1277 = vperm.xlu1 %1900, %v2264_v55  }
 0x251   : > { %1901 = vset.pattern.permute.xlu1 %v2027_v46  ;;  %v2341_v46 = vld [vmem:[%s2185_s1] sm:$0xff] }
 0x252   : > { %1077 = vperm.xlu1 %1901, %v920_v58  }
 0x256   : > { %1902 = vset.pattern.permute.xlu1 %v2029_v59 }
 0x257   : > { %1125 = vperm.xlu1 %1902, %v920_v58  }
 0x25b   : > { %1903 = vset.pattern.permute.xlu1 %v2031_v61 }
 0x25c   : > { %1281 = vperm.xlu1 %1903, %v1795_v57  }
 0x260   : > { %1905 = vset.pattern.permute.xlu1 %v2030_v60 }
 0x261   : > { %1221 = vperm.xlu1 %1905, %v920_v58  }
 0x265   : > { %1906 = vset.pattern.permute.xlu1 %v2031_v61  ;;  %v1730_v61 = vmul.f32 -1.442695, %v2261_v44 }
 0x266   : > { %1269 = vperm.xlu1 %1906, %v920_v58  }
 0x26a   : > { %1907 = vset.pattern.permute.xlu1 %v2033_v63 }
 0x26b   : > { %1329 = vperm.xlu1 %1907, %v1795_v57  }
 0x26f   : > { %1908 = vset.pattern.permute.xlu1 %v2034_v0 }
 0x270   : > { %1365 = vperm.xlu1 %1908, %v920_v58   ;;  %v1202_v58 = vsub.s32 4, %v2331_v34 }
 0x274   : > { %1373 = vperm.xlu1 %1908, %v2264_v55  }
 0x295   : > { %v2277_v1 = vpop.permute.xlu1 %1085  ;;  %v2313_v21 = vpop.permute.xlu0 %1035 }
 0x299   : > { %v2317_v24 = vpop.permute.xlu0 %1021 }
 0x29a   : > { %v2279_v3 = vpop.permute.xlu1 %1133 }
 0x29e   : > { %v2321_v26 = vpop.permute.xlu0 %1121 }
 0x29f   : > { %v2281_v4 = vpop.permute.xlu1 %1229 }
 0x2a3   : > { %v2325_v30 = vpop.permute.xlu0 %1265 }
 0x2a4   : > { %v2289_v7 = vpop.permute.xlu1 %1073 }
 0x2a8   : > { %v2329_v33 = vpop.permute.xlu0 %1089 }
 0x2a9   : > { %v2296_v9 = vpop.permute.xlu1 %1169 }
 0x2ad   : > { %v2335_v42 = vpop.permute.xlu0 %1233 }
 0x2ae   : > { %v2302_v11 = vpop.permute.xlu1 %1217 }
 0x2b2   : > { %v1027_v57 = vpop.permute.xlu0 %1026 }
 0x2b3   : > { %v2304_v12 = vpop.permute.xlu1 %1313 }
 0x2b8   : > { %v2311_v18 = vpop.permute.xlu1 %1361 }
 0x2bd   : > { %v2315_v23 = vpop.permute.xlu1 %1040 }
 0x2c2   : > { %v2319_v25 = vpop.permute.xlu1 %1137 }
 0x2c7   : > { %v2323_v29 = vpop.permute.xlu1 %1185 }
 0x2cc   : > { %v2327_v32 = vpop.permute.xlu1 %1277 }
 0x2d1   : > { %v1078_v36 = vpop.permute.xlu1 %1077 }
 0x2d6   : > { %v1126_v51 = vpop.permute.xlu1 %1125 }
 0x2e3   : > { %v983_v14 = vpop.f32.mrb[12].mxu1 }
 0x2e4   : > { %v984_v15 = vadd.f32 %v1727_v13, %v983_v14  ;;  %v1800_v16 = vpop.f32.mrb[13].mxu1  ;;  %v2364_v13 = vpop.permute.xlu1 %1281  ;;  %v1298_v14 = vsub.s32 6, %v2331_v34 }
 0x2e5   : > { %v986_v17 = vpop.f32.mrb[14].mxu1 }
 0x2e6   : > { %v990_v19 = vand.u32 2147483647, %v984_v15  ;;  %v1801_v20 = vpop.f32.mrb[15].mxu1  ;;  %v989_v37 = vmax.f32 %v984_v15, 0.0 }
 0x2e7   : > { %v2371_v20 = vpop.permute.xlu0 %1181 }
 0x2e8   : > { %v991_v2 = vsub.f32 0.0, %v990_v19 }
 0x2ea   : > { %v992_v22 = vmul.f32 1.442695, %v991_v2 }
 0x2ec   : > { %1928 = vpow2.f32 %v992_v22 }
 0x2f6   : > { %v1929_v27 = vpop.eup %1928 }
 0x2f7   : > { %v994_v28 = vadd.f32 1.0, %v1929_v27 }
 0x2f9   : > { %1930 = vlog2.f32 %v994_v28 }
 0x303   : > { %v1931_v35 = vpop.eup %1930 }
 0x304   : > { %v996_v39 = vmul.f32 0.6931472, %v1931_v35 }
 0x306   : > { %v2337_v43 = vadd.f32 %v996_v39, %v989_v37 }
 0x308   : > { %v1006_v48 = vrot.slane %v2337_v43, %v1005_v40  ;;  %v1059_v49 = vrot.slane %v2337_v43, %v1058_v41  ;;  %v1107_v55 = vrot.slane %v2337_v43, %v1106_v45  ;;  %v2358_v62 = vmul.f32 %v2337_v43, %v2242_v38 }
 0x309   : > { %v1155_v63 = vrot.slane %v2337_v43, %v1154_v50  ;;  %v1203_v15 = vrot.slane %v2337_v43, %v1202_v58  ;;  %v1251_v31 = vrot.slane %v2337_v43, %v1250_v6  ;;  %v1299_v39 = vrot.slane %v2337_v43, %v1298_v14 }
 0x30a   : > { %v1007_v52 = vmul.f32 %v1006_v48, %v2341_v46  ;;  %v1008_v53 = vmul.f32 %v1006_v48, %v2344_v47  ;;  %v1060_v54 = vmul.f32 %v1059_v49, %v2341_v46  ;;  %v1061_v56 = vmul.f32 %v1059_v49, %v2344_v47 }
 0x30b   : > { %v1108_v5 = vmul.f32 %v1107_v55, %v2341_v46  ;;  %v1109_v10 = vmul.f32 %v1107_v55, %v2344_v47  ;;  %v1018_v16 = vrot.slane %v2358_v62, %v1005_v40  ;;  %v1071_v17 = vrot.slane %v2358_v62, %v1058_v41 }
 0x30c   : > { %v1009_v59 = vmul.f32 1.442695, %v1007_v52  ;;  %v1011_v60 = vmul.f32 1.442695, %v1008_v53  ;;  %v1062_v0 = vmul.f32 1.442695, %v1060_v54  ;;  %v1156_v19 = vmul.f32 %v1155_v63, %v2341_v46  ;;  %v1222_v53 = vpop.permute.xlu1 %1221 }
 0x30d   : > { %v1064_v8 = vmul.f32 1.442695, %v1061_v56  ;;  %v1110_v2 = vmul.f32 1.442695, %v1108_v5  ;;  %v1157_v22 = vmul.f32 %v1155_v63, %v2344_v47  ;;  %v1112_v27 = vmul.f32 1.442695, %v1109_v10 }
 0x30e   : > { %1932 = vpow2.f32 %v1009_v59  ;;  %v1119_v28 = vrot.slane %v2358_v62, %v1106_v45  ;;  %v1167_v35 = vrot.slane %v2358_v62, %v1154_v50  ;;  %v1204_v37 = vmul.f32 %v1203_v15, %v2341_v46  ;;  %v1001_v45 = vld [vmem:[#allocation3] sm:$0xff]  ;;  %v1002_v56 = vld [vmem:[#allocation3 + $0x8] sm:$0xff] }
 0x30f   : > { %1934 = vpow2.f32 %v1011_v60  ;;  %v1346_v40 = vsub.s32 7, %v2331_v34  ;;  %v1029_v41 = vmul.f32 %v2317_v24, %v1018_v16  ;;  %v1030_v48 = vmul.f32 %v1027_v57, %v1018_v16  ;;  %v1174_v57 = vpop.permute.xlu0 %1173 }
 0x310   : > { %1936 = vpow2.f32 %v1730_v61  ;;  %v1080_v49 = vmul.f32 %v2289_v7, %v1071_v17  ;;  %v1158_v52 = vmul.f32 1.442695, %v1156_v19  ;;  %v1081_v54 = vmul.f32 %v1078_v36, %v1071_v17 }
 0x311   : > { %1938 = vpow2.f32 %v1062_v0  ;;  %v1160_v55 = vmul.f32 1.442695, %v1157_v22  ;;  %v1205_v50 = vmul.f32 %v1203_v15, %v2344_v47  ;;  %v1128_v59 = vmul.f32 %v2321_v26, %v1119_v28 }
 0x312   : > { %1940 = vpow2.f32 %v1064_v8  ;;  %v1215_v60 = vrot.slane %v2358_v62, %v1202_v58  ;;  %v1252_v61 = vmul.f32 %v1251_v31, %v2341_v46  ;;  %v1129_v63 = vmul.f32 %v1126_v51, %v1119_v28 }
 0x313   : > { %1942 = vpow2.f32 %v1110_v2  ;;  %v2389_v7 = vmul.f32 %v2296_v9, %v1167_v35  ;;  %v1206_v0 = vmul.f32 1.442695, %v1204_v37  ;;  %v1253_v36 = vmul.f32 %v1251_v31, %v2344_v47 }
 0x314   : > { %1944 = vpow2.f32 %v1112_v27  ;;  %v2392_v10 = vmul.f32 %v1174_v57, %v1167_v35  ;;  %v1263_v26 = vrot.slane %v2358_v62, %v1250_v6  ;;  %v1208_v58 = vmul.f32 1.442695, %v1205_v50  ;;  %v1270_v27 = vpop.permute.xlu1 %1269 }
 0x315   : > { %1946 = vpow2.f32 %v1158_v52  ;;  %v1300_v16 = vmul.f32 %v1299_v39, %v2341_v46  ;;  %v2399_v9 = vmul.f32 %v2302_v11, %v1215_v60  ;;  %v2401_v19 = vmul.f32 %v1222_v53, %v1215_v60 }
 0x316   : > { %1948 = vpow2.f32 %v1160_v55  ;;  %v1254_v2 = vmul.f32 1.442695, %v1252_v61  ;;  %v1256_v31 = vmul.f32 1.442695, %v1253_v36  ;;  %v1347_v6 = vrot.slane %v2337_v43, %v1346_v40 }
 0x317   : > { %1950 = vpow2.f32 %v1206_v0  ;;  %v2410_v11 = vmul.f32 %v1270_v27, %v1263_v26 }
 0x318   : > { %v1933_v24 = vpop.eup %1932  ;;  %1952 = vpow2.f32 %v1208_v58 }
 0x319   : > { %v1935_v5 = vpop.eup %1934  ;;  %v1013_v8 = vmul.f32 %v1933_v24, %v1001_v45  ;;  %1954 = vpow2.f32 %v1254_v2 }
 0x31a   : > { %v1014_v15 = vmul.f32 %v1935_v5, %v1002_v56  ;;  %v2396_v17 = vpop.eup %1936  ;;  %v1302_v56 = vmul.f32 1.442695, %v1300_v16  ;;  %v1349_v5 = vmul.f32 %v1347_v6, %v2344_v47  ;;  %1956 = vpow2.f32 %v1256_v31 }
 0x31b   : > { %v1031_v51 = vadd.f32 %v1029_v41, %v1013_v8  ;;  %v1939_v22 = vpop.eup %1938  ;;  %v2408_v41 = vmul.f32 %v2325_v30, %v1263_v26 }
 0x31c   : > { %v1032_v28 = vadd.f32 %v1030_v48, %v1014_v15  ;;  %v1941_v35 = vpop.eup %1940  ;;  %v1301_v48 = vmul.f32 %v1299_v39, %v2344_v47  ;;  %1958 = vpow2.f32 %v1302_v56 }
 0x31d   : > { %v1043_v37 = vmul.f32 %v2313_v21, %v1031_v51  ;;  %v1066_v52 = vmul.f32 %v1939_v22, %v1031_v51  ;;  %v2418_v21 = vrot.slane %v2358_v62, %v1298_v14  ;;  %v1943_v43 = vpop.eup %1942 }
 0x31e   : > { %v1044_v53 = vmul.f32 %v2315_v23, %v1032_v28  ;;  %v1067_v45 = vmul.f32 %v1941_v35, %v1032_v28  ;;  %v1348_v23 = vmul.f32 %v1347_v6, %v2341_v46  ;;  %v1945_v61 = vpop.eup %1944  ;;  %v1304_v36 = vmul.f32 1.442695, %v1301_v48 }
 0x31f   : > { %v1045_v55 = vsel %vm737_vm4, %v1043_v37, 0.0  ;;  %v1082_v50 = vadd.f32 %v1080_v49, %v1066_v52  ;;  %v2426_v49 = vrot.slane %v2358_v62, %v1346_v40  ;;  %v2432_v40 = vpop.permute.xlu0 %1325  ;;  %v2440_v52 = vpop.permute.xlu1 %1329 }
 0x320   : > { %v1046_v30 = vsel %vm737_vm4, %v1044_v53, 0.0  ;;  %v1083_v60 = vadd.f32 %v1081_v54, %v1067_v45  ;;  %v1947_v54 = vpop.eup %1946  ;;  %v1350_v62 = vmul.f32 1.442695, %v1348_v23  ;;  %1960 = vpow2.f32 %v1304_v36 }
 0x321   : > { %v1047_v24 = vadd.f32 %v1046_v30, %v1045_v55  ;;  %v1092_v39 = vmul.f32 %v2277_v1, %v1082_v50  ;;  %v1114_v57 = vmul.f32 %v1943_v43, %v1082_v50  ;;  %v1949_v15 = vpop.eup %1948 }
 0x322   : > { %v1093_v14 = vmul.f32 %v2329_v33, %v1083_v60  ;;  %v1115_v0 = vmul.f32 %v1945_v61, %v1083_v60  ;;  %v1951_v51 = vpop.eup %1950  ;;  %1962 = vpow2.f32 %v1350_v62 }
 0x323   : > { %v1048_v8 = vrot.slane %v1047_v24, 4  ;;  %v1094_v46 = vsel %vm737_vm4, %v1092_v39, 0.0  ;;  %v1130_v26 = vadd.f32 %v1128_v59, %v1114_v57  ;;  %v1352_v59 = vmul.f32 1.442695, %v1349_v5  ;;  %v1953_v6 = vpop.eup %1952  ;;  %v1318_v43 = vpop.permute.xlu0 %1317 }
 0x324   : > { %v1095_v1 = vsel %vm737_vm4, %v1093_v14, 0.0  ;;  %v1131_v34 = vadd.f32 %v1129_v63, %v1115_v0  ;;  %v1955_v55 = vpop.eup %1954 }
 0x325   : > { %v1049_v33 = vadd.f32 %v1048_v8, %v1047_v24  ;;  %v1096_v58 = vadd.f32 %v1095_v1, %v1094_v46  ;;  %v1140_v16 = vmul.f32 %v2279_v3, %v1130_v26  ;;  %v1162_v47 = vmul.f32 %v1947_v54, %v1130_v26  ;;  %v1957_v39 = vpop.eup %1956  ;;  %v1366_v26 = vpop.permute.xlu1 %1365 }
 0x326   : > { %v1141_v2 = vmul.f32 %v2319_v25, %v1131_v34  ;;  %v1163_v22 = vmul.f32 %v1949_v15, %v1131_v34  ;;  %v1320_v3 = vmul.f32 %v2304_v12, %v2418_v21  ;;  %1964 = vpow2.f32 %v1352_v59  ;;  %v1959_v36 = vpop.eup %1958 }
 0x327   : > { %v1050_v27 = vrot.slane %v1049_v33, 2  ;;  %v1097_v28 = vrot.slane %v1096_v58, 4  ;;  %v1142_v31 = vsel %vm737_vm4, %v1140_v16, 0.0  ;;  %v1178_v63 = vadd.f32 %v2389_v7, %v1162_v47 }
 0x328   : > { %v1143_v35 = vsel %vm737_vm4, %v1141_v2, 0.0  ;;  %v1179_v37 = vadd.f32 %v2392_v10, %v1163_v22 }
 0x329   : > { %v1051_v25 = vadd.f32 %v1050_v27, %v1049_v33  ;;  %v1098_v53 = vadd.f32 %v1097_v28, %v1096_v58  ;;  %v1144_v45 = vadd.f32 %v1143_v35, %v1142_v31  ;;  %v1188_v48 = vmul.f32 %v2371_v20, %v1178_v63 }
 0x32a   : > { %v1189_v50 = vmul.f32 %v2323_v29, %v1179_v37  ;;  %v1210_v7 = vmul.f32 %v1951_v51, %v1178_v63  ;;  %v1211_v56 = vmul.f32 %v1953_v6, %v1179_v37  ;;  %v1321_v20 = vmul.f32 %v1318_v43, %v2418_v21  ;;  %v1961_v1 = vpop.eup %1960 }
 0x32b   : > { %v1052_v30 = vrot.slane %v1051_v25, 1  ;;  %v1099_v10 = vrot.slane %v1098_v53, 2  ;;  %v1145_v60 = vrot.slane %v1144_v45, 4  ;;  %v1190_v23 = vsel %vm737_vm4, %v1188_v48, 0.0 }
 0x32c   : > { %v1191_v12 = vsel %vm737_vm4, %v1189_v50, 0.0  ;;  %v1226_v61 = vadd.f32 %v2399_v9, %v1210_v7  ;;  %v1227_v24 = vadd.f32 %v2401_v19, %v1211_v56  ;;  %v1369_v21 = vmul.f32 %v1366_v26, %v2426_v49  ;;  %v1963_v51 = vpop.eup %1962 }
 0x32d   : > { %v1053_v57 = vadd.f32 %v1052_v30, %v1051_v25  ;;  %v1100_v29 = vadd.f32 %v1099_v10, %v1098_v53  ;;  %v1146_v14 = vadd.f32 %v1145_v60, %v1144_v45  ;;  %v1192_v0 = vadd.f32 %v1191_v12, %v1190_v23  ;;  %v1378_v60 = vpop.permute.xlu0 %1377 }
 0x32e   : > { %v1236_v5 = vmul.f32 %v2281_v4, %v1226_v61  ;;  %v1237_v54 = vmul.f32 %v2335_v42, %v1227_v24  ;;  %v1258_v8 = vmul.f32 %v1955_v55, %v1226_v61  ;;  %v1259_v46 = vmul.f32 %v1957_v39, %v1227_v24  ;;  %v1374_v24 = vpop.permute.xlu1 %1373 }
 0x32f   : > { %1055 = vst.msk [vmem:[#allocation4] sm:$0x1] %vm1054_vm8, %v1053_v57  ;;  %v1101_v9 = vrot.slane %v1100_v29, 1  ;;  %v1147_v15 = vrot.slane %v1146_v14, 2  ;;  %v1193_v19 = vrot.slane %v1192_v0, 4 }
 0x330   : > { %v1238_v34 = vsel %vm737_vm4, %v1236_v5, 0.0  ;;  %v1239_v62 = vsel %vm737_vm4, %v1237_v54, 0.0  ;;  %v1274_v33 = vadd.f32 %v2408_v41, %v1258_v8  ;;  %v1275_v4 = vadd.f32 %v2410_v11, %v1259_v46  ;;  %v1965_v11 = vpop.eup %1964 }
 0x331   : > { %v1102_v42 = vadd.f32 %v1101_v9, %v1100_v29  ;;  %v1148_v58 = vadd.f32 %v1147_v15, %v1146_v14  ;;  %v1194_v16 = vadd.f32 %v1193_v19, %v1192_v0  ;;  %v1240_v47 = vadd.f32 %v1239_v62, %v1238_v34 }
 0x332   : > { %v1284_v2 = vmul.f32 %v2327_v32, %v1274_v33  ;;  %v1285_v22 = vmul.f32 %v2364_v13, %v1275_v4  ;;  %v1306_v59 = vmul.f32 %v1959_v36, %v1274_v33  ;;  %v1307_v27 = vmul.f32 %v1961_v1, %v1275_v4 }
 0x333   : > { %1103 = vst.msk [vmem:[#allocation4 + $0x1] sm:$0x1] %vm1054_vm8, %v1102_v42  ;;  %v1149_v28 = vrot.slane %v1148_v58, 1  ;;  %v1195_v31 = vrot.slane %v1194_v16, 2  ;;  %v1241_v63 = vrot.slane %v1240_v47, 4  ;;  %v1368_v41 = vmul.f32 %v2311_v18, %v2426_v49 }
 0x334   : > { %v1286_v6 = vsel %vm737_vm4, %v1284_v2, 0.0  ;;  %v1287_v35 = vsel %vm737_vm4, %v1285_v22, 0.0  ;;  %v1322_v37 = vadd.f32 %v1320_v3, %v1306_v59  ;;  %v1323_v25 = vadd.f32 %v1321_v20, %v1307_v27 }
 0x335   : > { %v1150_v32 = vadd.f32 %v1149_v28, %v1148_v58  ;;  %v1196_v53 = vadd.f32 %v1195_v31, %v1194_v16  ;;  %v1242_v13 = vadd.f32 %v1241_v63, %v1240_v47  ;;  %v1288_v45 = vadd.f32 %v1287_v35, %v1286_v6  ;;  %v1729_v16 = vld [vmem:[%s596_s0] ss:$0 sm:$0xff] }
 0x336   : > { %v1332_v48 = vmul.f32 %v2432_v40, %v1322_v37  ;;  %v1333_v55 = vmul.f32 %v2440_v52, %v1323_v25  ;;  %v1355_v50 = vmul.f32 %v1965_v11, %v1323_v25  ;;  %v1354_v7 = vmul.f32 %v1963_v51, %v1322_v37 }
 0x337   : > { %1151 = vst.msk [vmem:[#allocation4 + $0x2] sm:$0x1] %vm1054_vm8, %v1150_v32  ;;  %v1197_v18 = vrot.slane %v1196_v53, 1  ;;  %v1243_v49 = vrot.slane %v1242_v13, 2  ;;  %v1289_v56 = vrot.slane %v1288_v45, 4  ;;  %v1407_v1 = vadd.f32 1.0, %v2396_v17 }
 0x338   : > { %v1334_v43 = vsel %vm737_vm4, %v1332_v48, 0.0  ;;  %v1335_v3 = vsel %vm737_vm4, %v1333_v55, 0.0  ;;  %v1371_v30 = vadd.f32 %v1369_v21, %v1355_v50  ;;  %v1370_v10 = vadd.f32 %v1368_v41, %v1354_v7 }
 0x339   : > { %v1198_v23 = vadd.f32 %v1197_v18, %v1196_v53  ;;  %v1244_v12 = vadd.f32 %v1243_v49, %v1242_v13  ;;  %v1290_v61 = vadd.f32 %v1289_v56, %v1288_v45  ;;  %v1336_v40 = vadd.f32 %v1335_v3, %v1334_v43 }
 0x33a   : > { %v1381_v52 = vmul.f32 %v1378_v60, %v1371_v30  ;;  %1393 = vst.msk [vmem:[#allocation3 + $0x8] sm:$0xff] %vm737_vm4, %v1371_v30  ;;  %v1380_v20 = vmul.f32 %v1374_v24, %v1370_v10  ;;  %1392 = vst.msk [vmem:[#allocation3] sm:$0xff] %vm737_vm4, %v1370_v10  ;;  %1966 = vrcp.f32 %v1407_v1  ;;  %v1402_v47 = vmul.f32 %v1729_v16, %v2242_v38 }
 0x33b   : > { %1199 = vst.msk [vmem:[#allocation4 + $0x3] sm:$0x1] %vm1054_vm8, %v1198_v23  ;;  %v1245_v39 = vrot.slane %v1244_v12, 1  ;;  %v1291_v57 = vrot.slane %v1290_v61, 2  ;;  %v1337_v29 = vrot.slane %v1336_v40, 4 }
 0x33c   : > { %v1382_v14 = vsel %vm737_vm4, %v1380_v20, 0.0  ;;  %v1383_v0 = vsel %vm737_vm4, %v1381_v52, 0.0 }
 0x33d   : > { %v1246_v36 = vadd.f32 %v1245_v39, %v1244_v12  ;;  %v1292_v5 = vadd.f32 %v1291_v57, %v1290_v61  ;;  %v1338_v54 = vadd.f32 %v1337_v29, %v1336_v40  ;;  %v1384_v8 = vadd.f32 %v1383_v0, %v1382_v14 }
 0x33f   : > { %1247 = vst.msk [vmem:[#allocation4 + $0x4] sm:$0x1] %vm1054_vm8, %v1246_v36  ;;  %v1293_v46 = vrot.slane %v1292_v5, 1  ;;  %v1339_v26 = vrot.slane %v1338_v54, 2  ;;  %v1385_v9 = vrot.slane %v1384_v8, 4 }
 0x341   : > { %v1294_v15 = vadd.f32 %v1293_v46, %v1292_v5  ;;  %v1340_v19 = vadd.f32 %v1339_v26, %v1338_v54  ;;  %v1386_v21 = vadd.f32 %v1385_v9, %v1384_v8 }
 0x343   : > { %1295 = vst.msk [vmem:[#allocation4 + $0x5] sm:$0x1] %vm1054_vm8, %v1294_v15  ;;  %v1341_v34 = vrot.slane %v1340_v19, 1  ;;  %v1387_v62 = vrot.slane %v1386_v21, 2 }
 0x344   : > { %v1967_v17 = vpop.eup %1966 }
 0x345   : > { %v1342_v33 = vadd.f32 %v1341_v34, %v1340_v19  ;;  %v1388_v4 = vadd.f32 %v1387_v62, %v1386_v21  ;;  %v1410_v2 = vmul.f32 %v1967_v17, %v2261_v44 }
 0x347   : > { %1343 = vst.msk [vmem:[#allocation4 + $0x6] sm:$0x1] %vm1054_vm8, %v1342_v33  ;;  %v1389_v42 = vrot.slane %v1388_v4, 1 }
 0x349   : > { %v1390_v58 = vadd.f32 %v1389_v42, %v1388_v4 }
 0x34b   : > { %1391 = vst.msk [vmem:[#allocation4 + $0x7] sm:$0x1] %vm1054_vm8, %v1390_v58 }
 0x352   : > { %v1394_v51 = vld [vmem:[#allocation4] sm:$0xff] }
 0x353   : > { %v1403_v22 = vadd.f32 %v1402_v47, %v1394_v51 }
 0x355   : > { %v1411_v59 = vmul.f32 %v1410_v2, %v1403_v22 }
 0x357   : > { %v1412_v27 = vpack.c.bf16 %v1411_v59, %v1411_v59 }
 0x359   : > { %1811 = vmatmul.mubr.msk.bf16.vlgmr.msra.gmra.mrb[4].mxu0 %vm737_vm4, %v1412_v27 }
 0x42c   : > { %v1482_v28 = vpop.f32.mrb[4].mxu0 }
 0x42d   : > { %1488 = vst.msk [vmem:[%s2194_s4] sm:$0xff] %vm637_vm3, %v1482_v28  ;;  %v1812_v31 = vpop.f32.mrb[5].mxu0 }
 0x42e   : > { %v1485_v63 = vpop.f32.mrb[6].mxu0 }
 0x42f   : > { %v1813_v41 = vpop.f32.mrb[7].mxu0 }
 0x430 PF: > { %s2550_s22 = sld [smem:[#allocation8_spill]]  ;;  %s2551_s21 = sld [smem:[#allocation5_spill]] }
 0x431   : > { %s2553_s23 = sld [smem:[#allocation7_spill]]  ;;  %s2554_s24 = sld [smem:[#allocation9_spill]] }
 0x432   : > { %s2555_s25 = sld [smem:[#allocation10_spill]]  ;;  %s2556_s26 = sld [smem:[#allocation11_spill]] }
 0x436   : > { %s22_s27 = sadd.s32 1, %s2550_s22   ;;  %s2552_s22 = sld [smem:[#allocation6_spill]] }
 0x437   : > { %p19_p10 = scmp.ge.s32.totalorder %s22_s27, 10  }
 0x439   :  { %21 = sbr.rel (!%p19_p10) target bundleno = 6 (0x6), region = 126 }

</bundles_post_ra>
